<compile_context>
chip_gen: v7x
topology: tpu7x:2x2x1
jax: 0.10.0
libtpu: 0.0.40
codegen_flags: <defaults>
</compile_context>

<pallas_src>
import jax
import jax.numpy as jnp
import numpy as np
from jax.experimental import pallas as pl
from jax.experimental.pallas import tpu as pltpu

HEAD_PAD = 128  # lane-dense head / output width (actual logits live in [:13])


def _lstm_packed_kernel(x_ref, len_ref, wih1_ref, wstep_ref, b12_ref,
                        whead_ref, bhead_ref, out_ref):
    # x_ref:     (T*B, E)    bf16, time-major rows (t*B + b)
    # len_ref:   (B, 1)      i32
    # wih1_ref:  (E, 4H)     bf16  layer-1 input proj, gate cols [i, f, o, g]
    # wstep_ref: (2H, 8H)    bf16  [[whh1 | wih2], [0 | whh2]]
    # b12_ref:   (2, 4H)     f32   [b_l1; b_l2] (bih + bhh, reordered)
    # whead_ref: (H, 128)    bf16  [Wpol^T | Wval^T | 0-pad]
    # bhead_ref: (1, 128)    f32
    # out_ref:   (B, 128)    f32   (policy | value | pad)
    B = len_ref.shape[0]
    T = x_ref.shape[0] // B
    H = wstep_ref.shape[0] // 2

    lengths = len_ref[...]                 # (B, 1) i32
    b1 = b12_ref[0:1, :]                   # (1, 4H) f32
    b2 = b12_ref[1:2, :]                   # (1, 4H) f32
    wstep = wstep_ref[...]                 # (2H, 8H) bf16

    # Hoisted layer-1 input projection (+ bias): one wide MXU matmul for all T
    # steps, kept in registers (T*B x 4H f32 = 8 vregs at B=T=8, H=32).
    g1_all = (jnp.dot(x_ref[...], wih1_ref[...],
                      preferred_element_type=jnp.float32) + b1)

    def gates(g):
        # Gate column order is [i, f, o, g].  sigmoid(x) = 0.5*(tanh(x/2)+1):
        # one EUP op per gate block on the recurrence's critical path.
        sig = 0.5 * (jnp.tanh(0.5 * g[:, :3 * H]) + 1.0)
        i = sig[:, 0 * H:1 * H]
        f = sig[:, 1 * H:2 * H]
        o = sig[:, 2 * H:3 * H]
        gg = jnp.tanh(g[:, 3 * H:])
        return i, f, o, gg

    # ---- Peeled step 0: zero initial state and lengths >= 1, so there is no
    # recurrent term, no f*c term and no mask.
    i1, _, o1, gg1 = gates(g1_all[0:B, :])
    c1 = i1 * gg1
    h1 = o1 * jnp.tanh(c1)
    # Fused dot (h2 = 0, so its whh2 rows contribute nothing).
    lhs = jnp.concatenate([h1, jnp.zeros_like(h1)], axis=1).astype(jnp.bfloat16)
    fused = jnp.dot(lhs, wstep, preferred_element_type=jnp.float32)
    gl1_rec = fused[:, :4 * H]                      # layer-1 recurrence for t=1
    i2, _, o2, gg2 = gates(fused[:, 4 * H:] + b2)   # layer-2 gates for t=0
    c2 = i2 * gg2
    h2 = o2 * jnp.tanh(c2)

    # ---- Steps 1..T-1: ONE fused MXU dot per step.  Static Python unroll
    # (T is static); g1_all slices are static, sublane-aligned single vregs.
    for t in range(1, T):
        gl1 = g1_all[t * B:(t + 1) * B, :] + gl1_rec
        i1, f1, o1, gg1 = gates(gl1)
        c1n = f1 * c1 + i1 * gg1
        h1n = o1 * jnp.tanh(c1n)
        upd = t < lengths                           # (B, 1) bool
        h1 = jnp.where(upd, h1n, h1)
        c1 = jnp.where(upd, c1n, c1)
        # Masked h1 equals h1n on every valid step, so feeding it to layer 2
        # is exact; on frozen steps the layer-2 result is discarded anyway.
        lhs = jnp.concatenate([h1, h2], axis=1).astype(jnp.bfloat16)
        fused = jnp.dot(lhs, wstep, preferred_element_type=jnp.float32)
        gl1_rec = fused[:, :4 * H]                  # for step t+1
        i2, f2, o2, gg2 = gates(fused[:, 4 * H:] + b2)
        c2n = f2 * c2 + i2 * gg2
        h2n = o2 * jnp.tanh(c2n)
        h2 = jnp.where(upd, h2n, h2)
        c2 = jnp.where(upd, c2n, c2)

    # Fused, lane-padded policy/value head: one MXU dot, one dense vst.
    out_ref[...] = (jnp.dot(h2.astype(jnp.bfloat16), whead_ref[...],
                            preferred_element_type=jnp.float32)
                    + bhead_ref[...])


def _reorder_gate_rows(w):
    """PyTorch LSTM gate row blocks [i, f, g, o] -> [i, f, o, g]."""
    i, f, g, o = jnp.split(w, 4, axis=0)
    return jnp.concatenate([i, f, o, g], axis=0)


def _reorder_gate_vec(b):
    i, f, g, o = jnp.split(b, 4, axis=0)
    return jnp.concatenate([i, f, o, g], axis=0)


def init_params(key, embd_size, hidden_size):
    E, H = embd_size, hidden_size
    ks = jax.random.split(key, 13)
    bound = 1.0 / np.sqrt(H)

    def u(k, shape):
        return jax.random.uniform(k, shape, jnp.float32, -bound, bound)

    emb = jax.random.normal(ks[0], (13, E), jnp.float32)
    emb = emb.at[12].set(0.0)  # padding_idx = 12
    return dict(
        embedding=emb,
        w_ih_l0=u(ks[1], (4 * H, E)), w_hh_l0=u(ks[2], (4 * H, H)),
        b_ih_l0=u(ks[3], (4 * H,)),   b_hh_l0=u(ks[4], (4 * H,)),
        w_ih_l1=u(ks[5], (4 * H, H)), w_hh_l1=u(ks[6], (4 * H, H)),
        b_ih_l1=u(ks[7], (4 * H,)),   b_hh_l1=u(ks[8], (4 * H,)),
        w_pol=u(ks[9], (12, H)),      b_pol=u(ks[10], (12,)),
        w_val=u(ks[11], (1, H)),      b_val=u(ks[12], (1,)),
    )


def lstm_packed_forward(params, tokens, lengths):
    """tokens: (B, T) int32 in [0, 13); lengths: (B,) int32, 1 <= len <= T."""
    B, T = tokens.shape
    H = params['w_hh_l0'].shape[1]
    E = params['w_ih_l0'].shape[1]

    # Glue: embedding lookup, time-major, flatten (T, B) rows.
    x = jnp.take(params['embedding'], tokens.astype(jnp.int32), axis=0)  # (B,T,E)
    x2d = (jnp.transpose(x, (1, 0, 2))
           .reshape(T * B, E)
           .astype(jnp.bfloat16))                                        # (T*B,E)
    len2d = lengths.astype(jnp.int32).reshape(B, 1)

    # Gate-reordered, transposed weights (bf16 MXU operands, f32 biases).
    wih1 = _reorder_gate_rows(params['w_ih_l0']).T.astype(jnp.bfloat16)  # (E,4H)
    whh1 = _reorder_gate_rows(params['w_hh_l0']).T                        # (H,4H)
    wih2 = _reorder_gate_rows(params['w_ih_l1']).T                        # (H,4H)
    whh2 = _reorder_gate_rows(params['w_hh_l1']).T                        # (H,4H)
    # Fused step weight: one (2H, 8H) RHS resident across the whole recurrence.
    wstep_top = jnp.concatenate([whh1, wih2], axis=1)                     # (H,8H)
    wstep_bot = jnp.concatenate([jnp.zeros_like(whh2), whh2], axis=1)     # (H,8H)
    wstep = jnp.concatenate([wstep_top, wstep_bot],
                            axis=0).astype(jnp.bfloat16)                  # (2H,8H)
    b1 = _reorder_gate_vec(params['b_ih_l0'] + params['b_hh_l0'])
    b2 = _reorder_gate_vec(params['b_ih_l1'] + params['b_hh_l1'])
    b12 = jnp.stack([b1, b2], axis=0).astype(jnp.float32)                 # (2,4H)
    # Fused, lane-padded head: [Wpol^T | Wval^T | zeros] -> (H, 128).
    whead = jnp.concatenate(
        [params['w_pol'].T, params['w_val'].T,
         jnp.zeros((H, HEAD_PAD - 13), jnp.float32)],
        axis=1).astype(jnp.bfloat16)                                      # (H,128)
    bhead = jnp.concatenate(
        [params['b_pol'], params['b_val'],
         jnp.zeros((HEAD_PAD - 13,), jnp.float32)]
    ).reshape(1, HEAD_PAD).astype(jnp.float32)                            # (1,128)

    vmem = pl.BlockSpec(memory_space=pltpu.MemorySpace.VMEM)
    out = pl.pallas_call(
        _lstm_packed_kernel,
        out_shape=jax.ShapeDtypeStruct((B, HEAD_PAD), jnp.float32),
        in_specs=[vmem] * 7,
        out_specs=vmem,
    )(x2d, len2d, wih1, wstep, b12, whead, bhead)
    return out[:, :12], out[:, 12:13]


def reference_forward(params, tokens, lengths):
    """Pure-JAX f32 reference mirroring the PyTorch module (eval mode)."""
    B, T = tokens.shape
    H = params['w_hh_l0'].shape[1]
    x = jnp.take(params['embedding'], tokens.astype(jnp.int32), axis=0)  # (B,T,E)

    def cell(x_t, h, c, wih, whh, bih, bhh):
        g = x_t @ wih.T + h @ whh.T + bih + bhh
        i = jax.nn.sigmoid(g[:, 0 * H:1 * H])
        f = jax.nn.sigmoid(g[:, 1 * H:2 * H])
        gg = jnp.tanh(g[:, 2 * H:3 * H])
        o = jax.nn.sigmoid(g[:, 3 * H:4 * H])
        c = f * c + i * gg
        h = o * jnp.tanh(c)
        return h, c

    h1 = c1 = h2 = c2 = jnp.zeros((B, H), jnp.float32)
    for t in range(T):
        x_t = x[:, t, :]
        h1n, c1n = cell(x_t, h1, c1, params['w_ih_l0'], params['w_hh_l0'],
                        params['b_ih_l0'], params['b_hh_l0'])
        h2n, c2n = cell(h1n, h2, c2, params['w_ih_l1'], params['w_hh_l1'],
                        params['b_ih_l1'], params['b_hh_l1'])
        mask = (t < lengths)[:, None]
        h1 = jnp.where(mask, h1n, h1)
        c1 = jnp.where(mask, c1n, c1)
        h2 = jnp.where(mask, h2n, h2)
        c2 = jnp.where(mask, c2n, c2)
    policy = h2 @ params['w_pol'].T + params['b_pol']
    value = h2 @ params['w_val'].T + params['b_val']
    return policy, value


if __name__ == "__main__":
    B, T, E, H = 8, 8, 16, 32

    key = jax.random.PRNGKey(0)
    kp, kt, kl = jax.random.split(key, 3)
    params = init_params(kp, E, H)

    # lengths >= 1 (pack_padded_sequence's own restriction).
    lengths = jax.random.randint(kl, (B,), 1, T + 1).astype(jnp.int32)
    tokens = jax.random.randint(kt, (B, T), 0, 12).astype(jnp.int32)
    # pad positions past each sequence's length with padding_idx = 12
    pos = jnp.arange(T)[None, :]
    tokens = jnp.where(pos < lengths[:, None], tokens, 12)

    policy, value = lstm_packed_forward(params, tokens, lengths)
    policy = jax.block_until_ready(policy)
    value = jax.block_until_ready(value)

    ref_policy, ref_value = reference_forward(params, tokens, lengths)
    # bf16 MXU operands (f32 accumulation & f32 state/elementwise); recurrent
    # state is rounded to bf16 each step, so tolerance is T-dependent -- fine
    # at T=8, revisit for long sequences.
    np.testing.assert_allclose(np.asarray(policy), np.asarray(ref_policy),
                               rtol=2e-2, atol=2e-2)
    np.testing.assert_allclose(np.asarray(value), np.asarray(ref_value),
                               rtol=2e-2, atol=2e-2)

    print("KERNEL_OK")
</pallas_src>

<mosaic_0001>
module attributes {stable_mosaic.version = 11 : i64} {
  func.func @_lstm_packed_kernel(%arg0: memref<64x16xbf16, #tpu.memory_space<vmem>>, %arg1: memref<8x1xi32, #tpu.memory_space<vmem>>, %arg2: memref<16x128xbf16, #tpu.memory_space<vmem>>, %arg3: memref<64x256xbf16, #tpu.memory_space<vmem>>, %arg4: memref<2x128xf32, #tpu.memory_space<vmem>>, %arg5: memref<32x128xbf16, #tpu.memory_space<vmem>>, %arg6: memref<1x128xf32, #tpu.memory_space<vmem>>, %arg7: memref<8x128xf32, #tpu.memory_space<vmem>>) attributes {dimension_semantics = [], scalar_prefetch = 0 : i64, scratch_operands = 0 : i64, tpu.core_type = #tpu.core_type<tc>} {
    %c0 = arith.constant 0 : index
    %c0_0 = arith.constant 0 : index
    %0 = vector.load %arg1[%c0, %c0_0] : memref<8x1xi32, #tpu.memory_space<vmem>>, vector<8x1xi32>
    %c0_1 = arith.constant 0 : index
    %c0_2 = arith.constant 0 : index
    %1 = vector.load %arg4[%c0_1, %c0_2] : memref<2x128xf32, #tpu.memory_space<vmem>>, vector<1x128xf32>
    %c1 = arith.constant 1 : index
    %c0_3 = arith.constant 0 : index
    %2 = vector.load %arg4[%c1, %c0_3] : memref<2x128xf32, #tpu.memory_space<vmem>>, vector<1x128xf32>
    %c0_4 = arith.constant 0 : index
    %c0_5 = arith.constant 0 : index
    %3 = vector.load %arg3[%c0_4, %c0_5] : memref<64x256xbf16, #tpu.memory_space<vmem>>, vector<64x256xbf16>
    %c0_6 = arith.constant 0 : index
    %c0_7 = arith.constant 0 : index
    %4 = vector.load %arg0[%c0_6, %c0_7] : memref<64x16xbf16, #tpu.memory_space<vmem>>, vector<64x16xbf16>
    %c0_8 = arith.constant 0 : index
    %c0_9 = arith.constant 0 : index
    %5 = vector.load %arg2[%c0_8, %c0_9] : memref<16x128xbf16, #tpu.memory_space<vmem>>, vector<16x128xbf16>
    %cst = arith.constant dense<0.000000e+00> : vector<64x128xf32>
    %6 = tpu.matmul %4, %5, %cst {dimension_numbers = #tpu.dot_dimension_numbers<[1], [0], [0], [1], [0, 0, 1, 1], [], []>} : vector<64x16xbf16>, vector<16x128xbf16>, vector<64x128xf32> -> vector<64x128xf32>
    %7 = vector.broadcast %1 : vector<1x128xf32> to vector<64x128xf32>
    %8 = arith.addf %6, %7 : vector<64x128xf32>
    %9 = vector.extract_strided_slice %8 {offsets = [0, 0], sizes = [8, 128], strides = [1, 1]} : vector<64x128xf32> to vector<8x128xf32>
    %10 = vector.extract_strided_slice %9 {offsets = [0, 0], sizes = [8, 96], strides = [1, 1]} : vector<8x128xf32> to vector<8x96xf32>
    %cst_10 = arith.constant 5.000000e-01 : f32
    %11 = vector.broadcast %cst_10 : f32 to vector<8x96xf32>
    %12 = arith.mulf %11, %10 : vector<8x96xf32>
    %13 = math.tanh %12 : vector<8x96xf32>
    %cst_11 = arith.constant 1.000000e+00 : f32
    %14 = vector.broadcast %cst_11 : f32 to vector<8x96xf32>
    %15 = arith.addf %13, %14 : vector<8x96xf32>
    %cst_12 = arith.constant 5.000000e-01 : f32
    %16 = vector.broadcast %cst_12 : f32 to vector<8x96xf32>
    %17 = arith.mulf %16, %15 : vector<8x96xf32>
    %18 = vector.extract_strided_slice %17 {offsets = [0, 0], sizes = [8, 32], strides = [1, 1]} : vector<8x96xf32> to vector<8x32xf32>
    %19 = vector.extract_strided_slice %17 {offsets = [0, 64], sizes = [8, 32], strides = [1, 1]} : vector<8x96xf32> to vector<8x32xf32>
    %20 = vector.extract_strided_slice %9 {offsets = [0, 96], sizes = [8, 32], strides = [1, 1]} : vector<8x128xf32> to vector<8x32xf32>
    %21 = math.tanh %20 : vector<8x32xf32>
    %22 = arith.mulf %18, %21 : vector<8x32xf32>
    %23 = math.tanh %22 : vector<8x32xf32>
    %24 = arith.mulf %19, %23 : vector<8x32xf32>
    %cst_13 = arith.constant 0.000000e+00 : f32
    %25 = vector.broadcast %cst_13 : f32 to vector<8x32xf32>
    %26 = tpu.concatenate %24, %25 in 1 : vector<8x32xf32>, vector<8x32xf32> -> vector<8x64xf32>
    %27 = arith.truncf %26 : vector<8x64xf32> to vector<8x64xbf16>
    %cst_14 = arith.constant dense<0.000000e+00> : vector<8x256xf32>
    %28 = tpu.matmul %27, %3, %cst_14 {dimension_numbers = #tpu.dot_dimension_numbers<[1], [0], [0], [1], [0, 0, 1, 1], [], []>} : vector<8x64xbf16>, vector<64x256xbf16>, vector<8x256xf32> -> vector<8x256xf32>
    %29 = vector.extract_strided_slice %28 {offsets = [0, 0], sizes = [8, 128], strides = [1, 1]} : vector<8x256xf32> to vector<8x128xf32>
    %30 = vector.extract_strided_slice %28 {offsets = [0, 128], sizes = [8, 128], strides = [1, 1]} : vector<8x256xf32> to vector<8x128xf32>
    %31 = vector.broadcast %2 : vector<1x128xf32> to vector<8x128xf32>
    %32 = arith.addf %30, %31 : vector<8x128xf32>
    %33 = vector.extract_strided_slice %32 {offsets = [0, 0], sizes = [8, 96], strides = [1, 1]} : vector<8x128xf32> to vector<8x96xf32>
    %cst_15 = arith.constant 5.000000e-01 : f32
    %34 = vector.broadcast %cst_15 : f32 to vector<8x96xf32>
    %35 = arith.mulf %34, %33 : vector<8x96xf32>
    %36 = math.tanh %35 : vector<8x96xf32>
    %cst_16 = arith.constant 1.000000e+00 : f32
    %37 = vector.broadcast %cst_16 : f32 to vector<8x96xf32>
    %38 = arith.addf %36, %37 : vector<8x96xf32>
    %cst_17 = arith.constant 5.000000e-01 : f32
    %39 = vector.broadcast %cst_17 : f32 to vector<8x96xf32>
    %40 = arith.mulf %39, %38 : vector<8x96xf32>
    %41 = vector.extract_strided_slice %40 {offsets = [0, 0], sizes = [8, 32], strides = [1, 1]} : vector<8x96xf32> to vector<8x32xf32>
    %42 = vector.extract_strided_slice %40 {offsets = [0, 64], sizes = [8, 32], strides = [1, 1]} : vector<8x96xf32> to vector<8x32xf32>
    %43 = vector.extract_strided_slice %32 {offsets = [0, 96], sizes = [8, 32], strides = [1, 1]} : vector<8x128xf32> to vector<8x32xf32>
    %44 = math.tanh %43 : vector<8x32xf32>
    %45 = arith.mulf %41, %44 : vector<8x32xf32>
    %46 = math.tanh %45 : vector<8x32xf32>
    %47 = arith.mulf %42, %46 : vector<8x32xf32>
    %48 = vector.extract_strided_slice %8 {offsets = [8, 0], sizes = [8, 128], strides = [1, 1]} : vector<64x128xf32> to vector<8x128xf32>
    %49 = arith.addf %48, %29 : vector<8x128xf32>
    %50 = vector.extract_strided_slice %49 {offsets = [0, 0], sizes = [8, 96], strides = [1, 1]} : vector<8x128xf32> to vector<8x96xf32>
    %cst_18 = arith.constant 5.000000e-01 : f32
    %51 = vector.broadcast %cst_18 : f32 to vector<8x96xf32>
    %52 = arith.mulf %51, %50 : vector<8x96xf32>
    %53 = math.tanh %52 : vector<8x96xf32>
    %cst_19 = arith.constant 1.000000e+00 : f32
    %54 = vector.broadcast %cst_19 : f32 to vector<8x96xf32>
    %55 = arith.addf %53, %54 : vector<8x96xf32>
    %cst_20 = arith.constant 5.000000e-01 : f32
    %56 = vector.broadcast %cst_20 : f32 to vector<8x96xf32>
    %57 = arith.mulf %56, %55 : vector<8x96xf32>
    %58 = vector.extract_strided_slice %57 {offsets = [0, 0], sizes = [8, 32], strides = [1, 1]} : vector<8x96xf32> to vector<8x32xf32>
    %59 = vector.extract_strided_slice %57 {offsets = [0, 32], sizes = [8, 32], strides = [1, 1]} : vector<8x96xf32> to vector<8x32xf32>
    %60 = vector.extract_strided_slice %57 {offsets = [0, 64], sizes = [8, 32], strides = [1, 1]} : vector<8x96xf32> to vector<8x32xf32>
    %61 = vector.extract_strided_slice %49 {offsets = [0, 96], sizes = [8, 32], strides = [1, 1]} : vector<8x128xf32> to vector<8x32xf32>
    %62 = math.tanh %61 : vector<8x32xf32>
    %63 = arith.mulf %59, %22 : vector<8x32xf32>
    %64 = arith.mulf %58, %62 : vector<8x32xf32>
    %65 = arith.addf %63, %64 : vector<8x32xf32>
    %66 = math.tanh %65 : vector<8x32xf32>
    %67 = arith.mulf %60, %66 : vector<8x32xf32>
    %c1_i32 = arith.constant 1 : i32
    %68 = vector.broadcast %c1_i32 : i32 to vector<8x1xi32>
    %69 = arith.cmpi sgt, %0, %68 : vector<8x1xi32>
    %70 = vector.shape_cast %69 : vector<8x1xi1> to vector<8x1xi1>
    %71 = vector.broadcast %70 : vector<8x1xi1> to vector<8x32xi1>
    %72 = arith.select %71, %67, %24 : vector<8x32xi1>, vector<8x32xf32>
    %73 = vector.shape_cast %69 : vector<8x1xi1> to vector<8x1xi1>
    %74 = vector.broadcast %73 : vector<8x1xi1> to vector<8x32xi1>
    %75 = arith.select %74, %65, %22 : vector<8x32xi1>, vector<8x32xf32>
    %76 = tpu.concatenate %72, %47 in 1 : vector<8x32xf32>, vector<8x32xf32> -> vector<8x64xf32>
    %77 = arith.truncf %76 : vector<8x64xf32> to vector<8x64xbf16>
    %cst_21 = arith.constant dense<0.000000e+00> : vector<8x256xf32>
    %78 = tpu.matmul %77, %3, %cst_21 {dimension_numbers = #tpu.dot_dimension_numbers<[1], [0], [0], [1], [0, 0, 1, 1], [], []>} : vector<8x64xbf16>, vector<64x256xbf16>, vector<8x256xf32> -> vector<8x256xf32>
    %79 = vector.extract_strided_slice %78 {offsets = [0, 0], sizes = [8, 128], strides = [1, 1]} : vector<8x256xf32> to vector<8x128xf32>
    %80 = vector.extract_strided_slice %78 {offsets = [0, 128], sizes = [8, 128], strides = [1, 1]} : vector<8x256xf32> to vector<8x128xf32>
    %81 = vector.broadcast %2 : vector<1x128xf32> to vector<8x128xf32>
    %82 = arith.addf %80, %81 : vector<8x128xf32>
    %83 = vector.extract_strided_slice %82 {offsets = [0, 0], sizes = [8, 96], strides = [1, 1]} : vector<8x128xf32> to vector<8x96xf32>
    %cst_22 = arith.constant 5.000000e-01 : f32
    %84 = vector.broadcast %cst_22 : f32 to vector<8x96xf32>
    %85 = arith.mulf %84, %83 : vector<8x96xf32>
    %86 = math.tanh %85 : vector<8x96xf32>
    %cst_23 = arith.constant 1.000000e+00 : f32
    %87 = vector.broadcast %cst_23 : f32 to vector<8x96xf32>
    %88 = arith.addf %86, %87 : vector<8x96xf32>
    %cst_24 = arith.constant 5.000000e-01 : f32
    %89 = vector.broadcast %cst_24 : f32 to vector<8x96xf32>
    %90 = arith.mulf %89, %88 : vector<8x96xf32>
    %91 = vector.extract_strided_slice %90 {offsets = [0, 0], sizes = [8, 32], strides = [1, 1]} : vector<8x96xf32> to vector<8x32xf32>
    %92 = vector.extract_strided_slice %90 {offsets = [0, 32], sizes = [8, 32], strides = [1, 1]} : vector<8x96xf32> to vector<8x32xf32>
    %93 = vector.extract_strided_slice %90 {offsets = [0, 64], sizes = [8, 32], strides = [1, 1]} : vector<8x96xf32> to vector<8x32xf32>
    %94 = vector.extract_strided_slice %82 {offsets = [0, 96], sizes = [8, 32], strides = [1, 1]} : vector<8x128xf32> to vector<8x32xf32>
    %95 = math.tanh %94 : vector<8x32xf32>
    %96 = arith.mulf %92, %45 : vector<8x32xf32>
    %97 = arith.mulf %91, %95 : vector<8x32xf32>
    %98 = arith.addf %96, %97 : vector<8x32xf32>
    %99 = math.tanh %98 : vector<8x32xf32>
    %100 = arith.mulf %93, %99 : vector<8x32xf32>
    %101 = vector.shape_cast %69 : vector<8x1xi1> to vector<8x1xi1>
    %102 = vector.broadcast %101 : vector<8x1xi1> to vector<8x32xi1>
    %103 = arith.select %102, %100, %47 : vector<8x32xi1>, vector<8x32xf32>
    %104 = vector.shape_cast %69 : vector<8x1xi1> to vector<8x1xi1>
    %105 = vector.broadcast %104 : vector<8x1xi1> to vector<8x32xi1>
    %106 = arith.select %105, %98, %45 : vector<8x32xi1>, vector<8x32xf32>
    %107 = vector.extract_strided_slice %8 {offsets = [16, 0], sizes = [8, 128], strides = [1, 1]} : vector<64x128xf32> to vector<8x128xf32>
    %108 = arith.addf %107, %79 : vector<8x128xf32>
    %109 = vector.extract_strided_slice %108 {offsets = [0, 0], sizes = [8, 96], strides = [1, 1]} : vector<8x128xf32> to vector<8x96xf32>
    %cst_25 = arith.constant 5.000000e-01 : f32
    %110 = vector.broadcast %cst_25 : f32 to vector<8x96xf32>
    %111 = arith.mulf %110, %109 : vector<8x96xf32>
    %112 = math.tanh %111 : vector<8x96xf32>
    %cst_26 = arith.constant 1.000000e+00 : f32
    %113 = vector.broadcast %cst_26 : f32 to vector<8x96xf32>
    %114 = arith.addf %112, %113 : vector<8x96xf32>
    %cst_27 = arith.constant 5.000000e-01 : f32
    %115 = vector.broadcast %cst_27 : f32 to vector<8x96xf32>
    %116 = arith.mulf %115, %114 : vector<8x96xf32>
    %117 = vector.extract_strided_slice %116 {offsets = [0, 0], sizes = [8, 32], strides = [1, 1]} : vector<8x96xf32> to vector<8x32xf32>
    %118 = vector.extract_strided_slice %116 {offsets = [0, 32], sizes = [8, 32], strides = [1, 1]} : vector<8x96xf32> to vector<8x32xf32>
    %119 = vector.extract_strided_slice %116 {offsets = [0, 64], sizes = [8, 32], strides = [1, 1]} : vector<8x96xf32> to vector<8x32xf32>
    %120 = vector.extract_strided_slice %108 {offsets = [0, 96], sizes = [8, 32], strides = [1, 1]} : vector<8x128xf32> to vector<8x32xf32>
    %121 = math.tanh %120 : vector<8x32xf32>
    %122 = arith.mulf %118, %75 : vector<8x32xf32>
    %123 = arith.mulf %117, %121 : vector<8x32xf32>
    %124 = arith.addf %122, %123 : vector<8x32xf32>
    %125 = math.tanh %124 : vector<8x32xf32>
    %126 = arith.mulf %119, %125 : vector<8x32xf32>
    %c2_i32 = arith.constant 2 : i32
    %127 = vector.broadcast %c2_i32 : i32 to vector<8x1xi32>
    %128 = arith.cmpi sgt, %0, %127 : vector<8x1xi32>
    %129 = vector.shape_cast %128 : vector<8x1xi1> to vector<8x1xi1>
    %130 = vector.broadcast %129 : vector<8x1xi1> to vector<8x32xi1>
    %131 = arith.select %130, %126, %72 : vector<8x32xi1>, vector<8x32xf32>
    %132 = vector.shape_cast %128 : vector<8x1xi1> to vector<8x1xi1>
    %133 = vector.broadcast %132 : vector<8x1xi1> to vector<8x32xi1>
    %134 = arith.select %133, %124, %75 : vector<8x32xi1>, vector<8x32xf32>
    %135 = tpu.concatenate %131, %103 in 1 : vector<8x32xf32>, vector<8x32xf32> -> vector<8x64xf32>
    %136 = arith.truncf %135 : vector<8x64xf32> to vector<8x64xbf16>
    %cst_28 = arith.constant dense<0.000000e+00> : vector<8x256xf32>
    %137 = tpu.matmul %136, %3, %cst_28 {dimension_numbers = #tpu.dot_dimension_numbers<[1], [0], [0], [1], [0, 0, 1, 1], [], []>} : vector<8x64xbf16>, vector<64x256xbf16>, vector<8x256xf32> -> vector<8x256xf32>
    %138 = vector.extract_strided_slice %137 {offsets = [0, 0], sizes = [8, 128], strides = [1, 1]} : vector<8x256xf32> to vector<8x128xf32>
    %139 = vector.extract_strided_slice %137 {offsets = [0, 128], sizes = [8, 128], strides = [1, 1]} : vector<8x256xf32> to vector<8x128xf32>
    %140 = vector.broadcast %2 : vector<1x128xf32> to vector<8x128xf32>
    %141 = arith.addf %139, %140 : vector<8x128xf32>
    %142 = vector.extract_strided_slice %141 {offsets = [0, 0], sizes = [8, 96], strides = [1, 1]} : vector<8x128xf32> to vector<8x96xf32>
    %cst_29 = arith.constant 5.000000e-01 : f32
    %143 = vector.broadcast %cst_29 : f32 to vector<8x96xf32>
    %144 = arith.mulf %143, %142 : vector<8x96xf32>
    %145 = math.tanh %144 : vector<8x96xf32>
    %cst_30 = arith.constant 1.000000e+00 : f32
    %146 = vector.broadcast %cst_30 : f32 to vector<8x96xf32>
    %147 = arith.addf %145, %146 : vector<8x96xf32>
    %cst_31 = arith.constant 5.000000e-01 : f32
    %148 = vector.broadcast %cst_31 : f32 to vector<8x96xf32>
    %149 = arith.mulf %148, %147 : vector<8x96xf32>
    %150 = vector.extract_strided_slice %149 {offsets = [0, 0], sizes = [8, 32], strides = [1, 1]} : vector<8x96xf32> to vector<8x32xf32>
    %151 = vector.extract_strided_slice %149 {offsets = [0, 32], sizes = [8, 32], strides = [1, 1]} : vector<8x96xf32> to vector<8x32xf32>
    %152 = vector.extract_strided_slice %149 {offsets = [0, 64], sizes = [8, 32], strides = [1, 1]} : vector<8x96xf32> to vector<8x32xf32>
    %153 = vector.extract_strided_slice %141 {offsets = [0, 96], sizes = [8, 32], strides = [1, 1]} : vector<8x128xf32> to vector<8x32xf32>
    %154 = math.tanh %153 : vector<8x32xf32>
    %155 = arith.mulf %151, %106 : vector<8x32xf32>
    %156 = arith.mulf %150, %154 : vector<8x32xf32>
    %157 = arith.addf %155, %156 : vector<8x32xf32>
    %158 = math.tanh %157 : vector<8x32xf32>
    %159 = arith.mulf %152, %158 : vector<8x32xf32>
    %160 = vector.shape_cast %128 : vector<8x1xi1> to vector<8x1xi1>
    %161 = vector.broadcast %160 : vector<8x1xi1> to vector<8x32xi1>
    %162 = arith.select %161, %159, %103 : vector<8x32xi1>, vector<8x32xf32>
    %163 = vector.shape_cast %128 : vector<8x1xi1> to vector<8x1xi1>
    %164 = vector.broadcast %163 : vector<8x1xi1> to vector<8x32xi1>
    %165 = arith.select %164, %157, %106 : vector<8x32xi1>, vector<8x32xf32>
    %166 = vector.extract_strided_slice %8 {offsets = [24, 0], sizes = [8, 128], strides = [1, 1]} : vector<64x128xf32> to vector<8x128xf32>
    %167 = arith.addf %166, %138 : vector<8x128xf32>
    %168 = vector.extract_strided_slice %167 {offsets = [0, 0], sizes = [8, 96], strides = [1, 1]} : vector<8x128xf32> to vector<8x96xf32>
    %cst_32 = arith.constant 5.000000e-01 : f32
    %169 = vector.broadcast %cst_32 : f32 to vector<8x96xf32>
    %170 = arith.mulf %169, %168 : vector<8x96xf32>
    %171 = math.tanh %170 : vector<8x96xf32>
    %cst_33 = arith.constant 1.000000e+00 : f32
    %172 = vector.broadcast %cst_33 : f32 to vector<8x96xf32>
    %173 = arith.addf %171, %172 : vector<8x96xf32>
    %cst_34 = arith.constant 5.000000e-01 : f32
    %174 = vector.broadcast %cst_34 : f32 to vector<8x96xf32>
    %175 = arith.mulf %174, %173 : vector<8x96xf32>
    %176 = vector.extract_strided_slice %175 {offsets = [0, 0], sizes = [8, 32], strides = [1, 1]} : vector<8x96xf32> to vector<8x32xf32>
    %177 = vector.extract_strided_slice %175 {offsets = [0, 32], sizes = [8, 32], strides = [1, 1]} : vector<8x96xf32> to vector<8x32xf32>
    %178 = vector.extract_strided_slice %175 {offsets = [0, 64], sizes = [8, 32], strides = [1, 1]} : vector<8x96xf32> to vector<8x32xf32>
    %179 = vector.extract_strided_slice %167 {offsets = [0, 96], sizes = [8, 32], strides = [1, 1]} : vector<8x128xf32> to vector<8x32xf32>
    %180 = math.tanh %179 : vector<8x32xf32>
    %181 = arith.mulf %177, %134 : vector<8x32xf32>
    %182 = arith.mulf %176, %180 : vector<8x32xf32>
    %183 = arith.addf %181, %182 : vector<8x32xf32>
    %184 = math.tanh %183 : vector<8x32xf32>
    %185 = arith.mulf %178, %184 : vector<8x32xf32>
    %c3_i32 = arith.constant 3 : i32
    %186 = vector.broadcast %c3_i32 : i32 to vector<8x1xi32>
    %187 = arith.cmpi sgt, %0, %186 : vector<8x1xi32>
    %188 = vector.shape_cast %187 : vector<8x1xi1> to vector<8x1xi1>
    %189 = vector.broadcast %188 : vector<8x1xi1> to vector<8x32xi1>
    %190 = arith.select %189, %185, %131 : vector<8x32xi1>, vector<8x32xf32>
    %191 = vector.shape_cast %187 : vector<8x1xi1> to vector<8x1xi1>
    %192 = vector.broadcast %191 : vector<8x1xi1> to vector<8x32xi1>
    %193 = arith.select %192, %183, %134 : vector<8x32xi1>, vector<8x32xf32>
    %194 = tpu.concatenate %190, %162 in 1 : vector<8x32xf32>, vector<8x32xf32> -> vector<8x64xf32>
    %195 = arith.truncf %194 : vector<8x64xf32> to vector<8x64xbf16>
    %cst_35 = arith.constant dense<0.000000e+00> : vector<8x256xf32>
    %196 = tpu.matmul %195, %3, %cst_35 {dimension_numbers = #tpu.dot_dimension_numbers<[1], [0], [0], [1], [0, 0, 1, 1], [], []>} : vector<8x64xbf16>, vector<64x256xbf16>, vector<8x256xf32> -> vector<8x256xf32>
    %197 = vector.extract_strided_slice %196 {offsets = [0, 0], sizes = [8, 128], strides = [1, 1]} : vector<8x256xf32> to vector<8x128xf32>
    %198 = vector.extract_strided_slice %196 {offsets = [0, 128], sizes = [8, 128], strides = [1, 1]} : vector<8x256xf32> to vector<8x128xf32>
    %199 = vector.broadcast %2 : vector<1x128xf32> to vector<8x128xf32>
    %200 = arith.addf %198, %199 : vector<8x128xf32>
    %201 = vector.extract_strided_slice %200 {offsets = [0, 0], sizes = [8, 96], strides = [1, 1]} : vector<8x128xf32> to vector<8x96xf32>
    %cst_36 = arith.constant 5.000000e-01 : f32
    %202 = vector.broadcast %cst_36 : f32 to vector<8x96xf32>
    %203 = arith.mulf %202, %201 : vector<8x96xf32>
    %204 = math.tanh %203 : vector<8x96xf32>
    %cst_37 = arith.constant 1.000000e+00 : f32
    %205 = vector.broadcast %cst_37 : f32 to vector<8x96xf32>
    %206 = arith.addf %204, %205 : vector<8x96xf32>
    %cst_38 = arith.constant 5.000000e-01 : f32
    %207 = vector.broadcast %cst_38 : f32 to vector<8x96xf32>
    %208 = arith.mulf %207, %206 : vector<8x96xf32>
    %209 = vector.extract_strided_slice %208 {offsets = [0, 0], sizes = [8, 32], strides = [1, 1]} : vector<8x96xf32> to vector<8x32xf32>
    %210 = vector.extract_strided_slice %208 {offsets = [0, 32], sizes = [8, 32], strides = [1, 1]} : vector<8x96xf32> to vector<8x32xf32>
    %211 = vector.extract_strided_slice %208 {offsets = [0, 64], sizes = [8, 32], strides = [1, 1]} : vector<8x96xf32> to vector<8x32xf32>
    %212 = vector.extract_strided_slice %200 {offsets = [0, 96], sizes = [8, 32], strides = [1, 1]} : vector<8x128xf32> to vector<8x32xf32>
    %213 = math.tanh %212 : vector<8x32xf32>
    %214 = arith.mulf %210, %165 : vector<8x32xf32>
    %215 = arith.mulf %209, %213 : vector<8x32xf32>
    %216 = arith.addf %214, %215 : vector<8x32xf32>
    %217 = math.tanh %216 : vector<8x32xf32>
    %218 = arith.mulf %211, %217 : vector<8x32xf32>
    %219 = vector.shape_cast %187 : vector<8x1xi1> to vector<8x1xi1>
    %220 = vector.broadcast %219 : vector<8x1xi1> to vector<8x32xi1>
    %221 = arith.select %220, %218, %162 : vector<8x32xi1>, vector<8x32xf32>
    %222 = vector.shape_cast %187 : vector<8x1xi1> to vector<8x1xi1>
    %223 = vector.broadcast %222 : vector<8x1xi1> to vector<8x32xi1>
    %224 = arith.select %223, %216, %165 : vector<8x32xi1>, vector<8x32xf32>
    %225 = vector.extract_strided_slice %8 {offsets = [32, 0], sizes = [8, 128], strides = [1, 1]} : vector<64x128xf32> to vector<8x128xf32>
    %226 = arith.addf %225, %197 : vector<8x128xf32>
    %227 = vector.extract_strided_slice %226 {offsets = [0, 0], sizes = [8, 96], strides = [1, 1]} : vector<8x128xf32> to vector<8x96xf32>
    %cst_39 = arith.constant 5.000000e-01 : f32
    %228 = vector.broadcast %cst_39 : f32 to vector<8x96xf32>
    %229 = arith.mulf %228, %227 : vector<8x96xf32>
    %230 = math.tanh %229 : vector<8x96xf32>
    %cst_40 = arith.constant 1.000000e+00 : f32
    %231 = vector.broadcast %cst_40 : f32 to vector<8x96xf32>
    %232 = arith.addf %230, %231 : vector<8x96xf32>
    %cst_41 = arith.constant 5.000000e-01 : f32
    %233 = vector.broadcast %cst_41 : f32 to vector<8x96xf32>
    %234 = arith.mulf %233, %232 : vector<8x96xf32>
    %235 = vector.extract_strided_slice %234 {offsets = [0, 0], sizes = [8, 32], strides = [1, 1]} : vector<8x96xf32> to vector<8x32xf32>
    %236 = vector.extract_strided_slice %234 {offsets = [0, 32], sizes = [8, 32], strides = [1, 1]} : vector<8x96xf32> to vector<8x32xf32>
    %237 = vector.extract_strided_slice %234 {offsets = [0, 64], sizes = [8, 32], strides = [1, 1]} : vector<8x96xf32> to vector<8x32xf32>
    %238 = vector.extract_strided_slice %226 {offsets = [0, 96], sizes = [8, 32], strides = [1, 1]} : vector<8x128xf32> to vector<8x32xf32>
    %239 = math.tanh %238 : vector<8x32xf32>
    %240 = arith.mulf %236, %193 : vector<8x32xf32>
    %241 = arith.mulf %235, %239 : vector<8x32xf32>
    %242 = arith.addf %240, %241 : vector<8x32xf32>
    %243 = math.tanh %242 : vector<8x32xf32>
    %244 = arith.mulf %237, %243 : vector<8x32xf32>
    %c4_i32 = arith.constant 4 : i32
    %245 = vector.broadcast %c4_i32 : i32 to vector<8x1xi32>
    %246 = arith.cmpi sgt, %0, %245 : vector<8x1xi32>
    %247 = vector.shape_cast %246 : vector<8x1xi1> to vector<8x1xi1>
    %248 = vector.broadcast %247 : vector<8x1xi1> to vector<8x32xi1>
    %249 = arith.select %248, %244, %190 : vector<8x32xi1>, vector<8x32xf32>
    %250 = vector.shape_cast %246 : vector<8x1xi1> to vector<8x1xi1>
    %251 = vector.broadcast %250 : vector<8x1xi1> to vector<8x32xi1>
    %252 = arith.select %251, %242, %193 : vector<8x32xi1>, vector<8x32xf32>
    %253 = tpu.concatenate %249, %221 in 1 : vector<8x32xf32>, vector<8x32xf32> -> vector<8x64xf32>
    %254 = arith.truncf %253 : vector<8x64xf32> to vector<8x64xbf16>
    %cst_42 = arith.constant dense<0.000000e+00> : vector<8x256xf32>
    %255 = tpu.matmul %254, %3, %cst_42 {dimension_numbers = #tpu.dot_dimension_numbers<[1], [0], [0], [1], [0, 0, 1, 1], [], []>} : vector<8x64xbf16>, vector<64x256xbf16>, vector<8x256xf32> -> vector<8x256xf32>
    %256 = vector.extract_strided_slice %255 {offsets = [0, 0], sizes = [8, 128], strides = [1, 1]} : vector<8x256xf32> to vector<8x128xf32>
    %257 = vector.extract_strided_slice %255 {offsets = [0, 128], sizes = [8, 128], strides = [1, 1]} : vector<8x256xf32> to vector<8x128xf32>
    %258 = vector.broadcast %2 : vector<1x128xf32> to vector<8x128xf32>
    %259 = arith.addf %257, %258 : vector<8x128xf32>
    %260 = vector.extract_strided_slice %259 {offsets = [0, 0], sizes = [8, 96], strides = [1, 1]} : vector<8x128xf32> to vector<8x96xf32>
    %cst_43 = arith.constant 5.000000e-01 : f32
    %261 = vector.broadcast %cst_43 : f32 to vector<8x96xf32>
    %262 = arith.mulf %261, %260 : vector<8x96xf32>
    %263 = math.tanh %262 : vector<8x96xf32>
    %cst_44 = arith.constant 1.000000e+00 : f32
    %264 = vector.broadcast %cst_44 : f32 to vector<8x96xf32>
    %265 = arith.addf %263, %264 : vector<8x96xf32>
    %cst_45 = arith.constant 5.000000e-01 : f32
    %266 = vector.broadcast %cst_45 : f32 to vector<8x96xf32>
    %267 = arith.mulf %266, %265 : vector<8x96xf32>
    %268 = vector.extract_strided_slice %267 {offsets = [0, 0], sizes = [8, 32], strides = [1, 1]} : vector<8x96xf32> to vector<8x32xf32>
    %269 = vector.extract_strided_slice %267 {offsets = [0, 32], sizes = [8, 32], strides = [1, 1]} : vector<8x96xf32> to vector<8x32xf32>
    %270 = vector.extract_strided_slice %267 {offsets = [0, 64], sizes = [8, 32], strides = [1, 1]} : vector<8x96xf32> to vector<8x32xf32>
    %271 = vector.extract_strided_slice %259 {offsets = [0, 96], sizes = [8, 32], strides = [1, 1]} : vector<8x128xf32> to vector<8x32xf32>
    %272 = math.tanh %271 : vector<8x32xf32>
    %273 = arith.mulf %269, %224 : vector<8x32xf32>
    %274 = arith.mulf %268, %272 : vector<8x32xf32>
    %275 = arith.addf %273, %274 : vector<8x32xf32>
    %276 = math.tanh %275 : vector<8x32xf32>
    %277 = arith.mulf %270, %276 : vector<8x32xf32>
    %278 = vector.shape_cast %246 : vector<8x1xi1> to vector<8x1xi1>
    %279 = vector.broadcast %278 : vector<8x1xi1> to vector<8x32xi1>
    %280 = arith.select %279, %277, %221 : vector<8x32xi1>, vector<8x32xf32>
    %281 = vector.shape_cast %246 : vector<8x1xi1> to vector<8x1xi1>
    %282 = vector.broadcast %281 : vector<8x1xi1> to vector<8x32xi1>
    %283 = arith.select %282, %275, %224 : vector<8x32xi1>, vector<8x32xf32>
    %284 = vector.extract_strided_slice %8 {offsets = [40, 0], sizes = [8, 128], strides = [1, 1]} : vector<64x128xf32> to vector<8x128xf32>
    %285 = arith.addf %284, %256 : vector<8x128xf32>
    %286 = vector.extract_strided_slice %285 {offsets = [0, 0], sizes = [8, 96], strides = [1, 1]} : vector<8x128xf32> to vector<8x96xf32>
    %cst_46 = arith.constant 5.000000e-01 : f32
    %287 = vector.broadcast %cst_46 : f32 to vector<8x96xf32>
    %288 = arith.mulf %287, %286 : vector<8x96xf32>
    %289 = math.tanh %288 : vector<8x96xf32>
    %cst_47 = arith.constant 1.000000e+00 : f32
    %290 = vector.broadcast %cst_47 : f32 to vector<8x96xf32>
    %291 = arith.addf %289, %290 : vector<8x96xf32>
    %cst_48 = arith.constant 5.000000e-01 : f32
    %292 = vector.broadcast %cst_48 : f32 to vector<8x96xf32>
    %293 = arith.mulf %292, %291 : vector<8x96xf32>
    %294 = vector.extract_strided_slice %293 {offsets = [0, 0], sizes = [8, 32], strides = [1, 1]} : vector<8x96xf32> to vector<8x32xf32>
    %295 = vector.extract_strided_slice %293 {offsets = [0, 32], sizes = [8, 32], strides = [1, 1]} : vector<8x96xf32> to vector<8x32xf32>
    %296 = vector.extract_strided_slice %293 {offsets = [0, 64], sizes = [8, 32], strides = [1, 1]} : vector<8x96xf32> to vector<8x32xf32>
    %297 = vector.extract_strided_slice %285 {offsets = [0, 96], sizes = [8, 32], strides = [1, 1]} : vector<8x128xf32> to vector<8x32xf32>
    %298 = math.tanh %297 : vector<8x32xf32>
    %299 = arith.mulf %295, %252 : vector<8x32xf32>
    %300 = arith.mulf %294, %298 : vector<8x32xf32>
    %301 = arith.addf %299, %300 : vector<8x32xf32>
    %302 = math.tanh %301 : vector<8x32xf32>
    %303 = arith.mulf %296, %302 : vector<8x32xf32>
    %c5_i32 = arith.constant 5 : i32
    %304 = vector.broadcast %c5_i32 : i32 to vector<8x1xi32>
    %305 = arith.cmpi sgt, %0, %304 : vector<8x1xi32>
    %306 = vector.shape_cast %305 : vector<8x1xi1> to vector<8x1xi1>
    %307 = vector.broadcast %306 : vector<8x1xi1> to vector<8x32xi1>
    %308 = arith.select %307, %303, %249 : vector<8x32xi1>, vector<8x32xf32>
    %309 = vector.shape_cast %305 : vector<8x1xi1> to vector<8x1xi1>
    %310 = vector.broadcast %309 : vector<8x1xi1> to vector<8x32xi1>
    %311 = arith.select %310, %301, %252 : vector<8x32xi1>, vector<8x32xf32>
    %312 = tpu.concatenate %308, %280 in 1 : vector<8x32xf32>, vector<8x32xf32> -> vector<8x64xf32>
    %313 = arith.truncf %312 : vector<8x64xf32> to vector<8x64xbf16>
    %cst_49 = arith.constant dense<0.000000e+00> : vector<8x256xf32>
    %314 = tpu.matmul %313, %3, %cst_49 {dimension_numbers = #tpu.dot_dimension_numbers<[1], [0], [0], [1], [0, 0, 1, 1], [], []>} : vector<8x64xbf16>, vector<64x256xbf16>, vector<8x256xf32> -> vector<8x256xf32>
    %315 = vector.extract_strided_slice %314 {offsets = [0, 0], sizes = [8, 128], strides = [1, 1]} : vector<8x256xf32> to vector<8x128xf32>
    %316 = vector.extract_strided_slice %314 {offsets = [0, 128], sizes = [8, 128], strides = [1, 1]} : vector<8x256xf32> to vector<8x128xf32>
    %317 = vector.broadcast %2 : vector<1x128xf32> to vector<8x128xf32>
    %318 = arith.addf %316, %317 : vector<8x128xf32>
    %319 = vector.extract_strided_slice %318 {offsets = [0, 0], sizes = [8, 96], strides = [1, 1]} : vector<8x128xf32> to vector<8x96xf32>
    %cst_50 = arith.constant 5.000000e-01 : f32
    %320 = vector.broadcast %cst_50 : f32 to vector<8x96xf32>
    %321 = arith.mulf %320, %319 : vector<8x96xf32>
    %322 = math.tanh %321 : vector<8x96xf32>
    %cst_51 = arith.constant 1.000000e+00 : f32
    %323 = vector.broadcast %cst_51 : f32 to vector<8x96xf32>
    %324 = arith.addf %322, %323 : vector<8x96xf32>
    %cst_52 = arith.constant 5.000000e-01 : f32
    %325 = vector.broadcast %cst_52 : f32 to vector<8x96xf32>
    %326 = arith.mulf %325, %324 : vector<8x96xf32>
    %327 = vector.extract_strided_slice %326 {offsets = [0, 0], sizes = [8, 32], strides = [1, 1]} : vector<8x96xf32> to vector<8x32xf32>
    %328 = vector.extract_strided_slice %326 {offsets = [0, 32], sizes = [8, 32], strides = [1, 1]} : vector<8x96xf32> to vector<8x32xf32>
    %329 = vector.extract_strided_slice %326 {offsets = [0, 64], sizes = [8, 32], strides = [1, 1]} : vector<8x96xf32> to vector<8x32xf32>
    %330 = vector.extract_strided_slice %318 {offsets = [0, 96], sizes = [8, 32], strides = [1, 1]} : vector<8x128xf32> to vector<8x32xf32>
    %331 = math.tanh %330 : vector<8x32xf32>
    %332 = arith.mulf %328, %283 : vector<8x32xf32>
    %333 = arith.mulf %327, %331 : vector<8x32xf32>
    %334 = arith.addf %332, %333 : vector<8x32xf32>
    %335 = math.tanh %334 : vector<8x32xf32>
    %336 = arith.mulf %329, %335 : vector<8x32xf32>
    %337 = vector.shape_cast %305 : vector<8x1xi1> to vector<8x1xi1>
    %338 = vector.broadcast %337 : vector<8x1xi1> to vector<8x32xi1>
    %339 = arith.select %338, %336, %280 : vector<8x32xi1>, vector<8x32xf32>
    %340 = vector.shape_cast %305 : vector<8x1xi1> to vector<8x1xi1>
    %341 = vector.broadcast %340 : vector<8x1xi1> to vector<8x32xi1>
    %342 = arith.select %341, %334, %283 : vector<8x32xi1>, vector<8x32xf32>
    %343 = vector.extract_strided_slice %8 {offsets = [48, 0], sizes = [8, 128], strides = [1, 1]} : vector<64x128xf32> to vector<8x128xf32>
    %344 = arith.addf %343, %315 : vector<8x128xf32>
    %345 = vector.extract_strided_slice %344 {offsets = [0, 0], sizes = [8, 96], strides = [1, 1]} : vector<8x128xf32> to vector<8x96xf32>
    %cst_53 = arith.constant 5.000000e-01 : f32
    %346 = vector.broadcast %cst_53 : f32 to vector<8x96xf32>
    %347 = arith.mulf %346, %345 : vector<8x96xf32>
    %348 = math.tanh %347 : vector<8x96xf32>
    %cst_54 = arith.constant 1.000000e+00 : f32
    %349 = vector.broadcast %cst_54 : f32 to vector<8x96xf32>
    %350 = arith.addf %348, %349 : vector<8x96xf32>
    %cst_55 = arith.constant 5.000000e-01 : f32
    %351 = vector.broadcast %cst_55 : f32 to vector<8x96xf32>
    %352 = arith.mulf %351, %350 : vector<8x96xf32>
    %353 = vector.extract_strided_slice %352 {offsets = [0, 0], sizes = [8, 32], strides = [1, 1]} : vector<8x96xf32> to vector<8x32xf32>
    %354 = vector.extract_strided_slice %352 {offsets = [0, 32], sizes = [8, 32], strides = [1, 1]} : vector<8x96xf32> to vector<8x32xf32>
    %355 = vector.extract_strided_slice %352 {offsets = [0, 64], sizes = [8, 32], strides = [1, 1]} : vector<8x96xf32> to vector<8x32xf32>
    %356 = vector.extract_strided_slice %344 {offsets = [0, 96], sizes = [8, 32], strides = [1, 1]} : vector<8x128xf32> to vector<8x32xf32>
    %357 = math.tanh %356 : vector<8x32xf32>
    %358 = arith.mulf %354, %311 : vector<8x32xf32>
    %359 = arith.mulf %353, %357 : vector<8x32xf32>
    %360 = arith.addf %358, %359 : vector<8x32xf32>
    %361 = math.tanh %360 : vector<8x32xf32>
    %362 = arith.mulf %355, %361 : vector<8x32xf32>
    %c6_i32 = arith.constant 6 : i32
    %363 = vector.broadcast %c6_i32 : i32 to vector<8x1xi32>
    %364 = arith.cmpi sgt, %0, %363 : vector<8x1xi32>
    %365 = vector.shape_cast %364 : vector<8x1xi1> to vector<8x1xi1>
    %366 = vector.broadcast %365 : vector<8x1xi1> to vector<8x32xi1>
    %367 = arith.select %366, %362, %308 : vector<8x32xi1>, vector<8x32xf32>
    %368 = vector.shape_cast %364 : vector<8x1xi1> to vector<8x1xi1>
    %369 = vector.broadcast %368 : vector<8x1xi1> to vector<8x32xi1>
    %370 = arith.select %369, %360, %311 : vector<8x32xi1>, vector<8x32xf32>
    %371 = tpu.concatenate %367, %339 in 1 : vector<8x32xf32>, vector<8x32xf32> -> vector<8x64xf32>
    %372 = arith.truncf %371 : vector<8x64xf32> to vector<8x64xbf16>
    %cst_56 = arith.constant dense<0.000000e+00> : vector<8x256xf32>
    %373 = tpu.matmul %372, %3, %cst_56 {dimension_numbers = #tpu.dot_dimension_numbers<[1], [0], [0], [1], [0, 0, 1, 1], [], []>} : vector<8x64xbf16>, vector<64x256xbf16>, vector<8x256xf32> -> vector<8x256xf32>
    %374 = vector.extract_strided_slice %373 {offsets = [0, 0], sizes = [8, 128], strides = [1, 1]} : vector<8x256xf32> to vector<8x128xf32>
    %375 = vector.extract_strided_slice %373 {offsets = [0, 128], sizes = [8, 128], strides = [1, 1]} : vector<8x256xf32> to vector<8x128xf32>
    %376 = vector.broadcast %2 : vector<1x128xf32> to vector<8x128xf32>
    %377 = arith.addf %375, %376 : vector<8x128xf32>
    %378 = vector.extract_strided_slice %377 {offsets = [0, 0], sizes = [8, 96], strides = [1, 1]} : vector<8x128xf32> to vector<8x96xf32>
    %cst_57 = arith.constant 5.000000e-01 : f32
    %379 = vector.broadcast %cst_57 : f32 to vector<8x96xf32>
    %380 = arith.mulf %379, %378 : vector<8x96xf32>
    %381 = math.tanh %380 : vector<8x96xf32>
    %cst_58 = arith.constant 1.000000e+00 : f32
    %382 = vector.broadcast %cst_58 : f32 to vector<8x96xf32>
    %383 = arith.addf %381, %382 : vector<8x96xf32>
    %cst_59 = arith.constant 5.000000e-01 : f32
    %384 = vector.broadcast %cst_59 : f32 to vector<8x96xf32>
    %385 = arith.mulf %384, %383 : vector<8x96xf32>
    %386 = vector.extract_strided_slice %385 {offsets = [0, 0], sizes = [8, 32], strides = [1, 1]} : vector<8x96xf32> to vector<8x32xf32>
    %387 = vector.extract_strided_slice %385 {offsets = [0, 32], sizes = [8, 32], strides = [1, 1]} : vector<8x96xf32> to vector<8x32xf32>
    %388 = vector.extract_strided_slice %385 {offsets = [0, 64], sizes = [8, 32], strides = [1, 1]} : vector<8x96xf32> to vector<8x32xf32>
    %389 = vector.extract_strided_slice %377 {offsets = [0, 96], sizes = [8, 32], strides = [1, 1]} : vector<8x128xf32> to vector<8x32xf32>
    %390 = math.tanh %389 : vector<8x32xf32>
    %391 = arith.mulf %387, %342 : vector<8x32xf32>
    %392 = arith.mulf %386, %390 : vector<8x32xf32>
    %393 = arith.addf %391, %392 : vector<8x32xf32>
    %394 = math.tanh %393 : vector<8x32xf32>
    %395 = arith.mulf %388, %394 : vector<8x32xf32>
    %396 = vector.shape_cast %364 : vector<8x1xi1> to vector<8x1xi1>
    %397 = vector.broadcast %396 : vector<8x1xi1> to vector<8x32xi1>
    %398 = arith.select %397, %395, %339 : vector<8x32xi1>, vector<8x32xf32>
    %399 = vector.shape_cast %364 : vector<8x1xi1> to vector<8x1xi1>
    %400 = vector.broadcast %399 : vector<8x1xi1> to vector<8x32xi1>
    %401 = arith.select %400, %393, %342 : vector<8x32xi1>, vector<8x32xf32>
    %402 = vector.extract_strided_slice %8 {offsets = [56, 0], sizes = [8, 128], strides = [1, 1]} : vector<64x128xf32> to vector<8x128xf32>
    %403 = arith.addf %402, %374 : vector<8x128xf32>
    %404 = vector.extract_strided_slice %403 {offsets = [0, 0], sizes = [8, 96], strides = [1, 1]} : vector<8x128xf32> to vector<8x96xf32>
    %cst_60 = arith.constant 5.000000e-01 : f32
    %405 = vector.broadcast %cst_60 : f32 to vector<8x96xf32>
    %406 = arith.mulf %405, %404 : vector<8x96xf32>
    %407 = math.tanh %406 : vector<8x96xf32>
    %cst_61 = arith.constant 1.000000e+00 : f32
    %408 = vector.broadcast %cst_61 : f32 to vector<8x96xf32>
    %409 = arith.addf %407, %408 : vector<8x96xf32>
    %cst_62 = arith.constant 5.000000e-01 : f32
    %410 = vector.broadcast %cst_62 : f32 to vector<8x96xf32>
    %411 = arith.mulf %410, %409 : vector<8x96xf32>
    %412 = vector.extract_strided_slice %411 {offsets = [0, 0], sizes = [8, 32], strides = [1, 1]} : vector<8x96xf32> to vector<8x32xf32>
    %413 = vector.extract_strided_slice %411 {offsets = [0, 32], sizes = [8, 32], strides = [1, 1]} : vector<8x96xf32> to vector<8x32xf32>
    %414 = vector.extract_strided_slice %411 {offsets = [0, 64], sizes = [8, 32], strides = [1, 1]} : vector<8x96xf32> to vector<8x32xf32>
    %415 = vector.extract_strided_slice %403 {offsets = [0, 96], sizes = [8, 32], strides = [1, 1]} : vector<8x128xf32> to vector<8x32xf32>
    %416 = math.tanh %415 : vector<8x32xf32>
    %417 = arith.mulf %413, %370 : vector<8x32xf32>
    %418 = arith.mulf %412, %416 : vector<8x32xf32>
    %419 = arith.addf %417, %418 : vector<8x32xf32>
    %420 = math.tanh %419 : vector<8x32xf32>
    %421 = arith.mulf %414, %420 : vector<8x32xf32>
    %c7_i32 = arith.constant 7 : i32
    %422 = vector.broadcast %c7_i32 : i32 to vector<8x1xi32>
    %423 = arith.cmpi sgt, %0, %422 : vector<8x1xi32>
    %424 = vector.shape_cast %423 : vector<8x1xi1> to vector<8x1xi1>
    %425 = vector.broadcast %424 : vector<8x1xi1> to vector<8x32xi1>
    %426 = arith.select %425, %421, %367 : vector<8x32xi1>, vector<8x32xf32>
    %427 = tpu.concatenate %426, %398 in 1 : vector<8x32xf32>, vector<8x32xf32> -> vector<8x64xf32>
    %428 = arith.truncf %427 : vector<8x64xf32> to vector<8x64xbf16>
    %cst_63 = arith.constant dense<0.000000e+00> : vector<8x256xf32>
    %429 = tpu.matmul %428, %3, %cst_63 {dimension_numbers = #tpu.dot_dimension_numbers<[1], [0], [0], [1], [0, 0, 1, 1], [], []>} : vector<8x64xbf16>, vector<64x256xbf16>, vector<8x256xf32> -> vector<8x256xf32>
    %430 = vector.extract_strided_slice %429 {offsets = [0, 128], sizes = [8, 128], strides = [1, 1]} : vector<8x256xf32> to vector<8x128xf32>
    %431 = vector.broadcast %2 : vector<1x128xf32> to vector<8x128xf32>
    %432 = arith.addf %430, %431 : vector<8x128xf32>
    %433 = vector.extract_strided_slice %432 {offsets = [0, 0], sizes = [8, 96], strides = [1, 1]} : vector<8x128xf32> to vector<8x96xf32>
    %cst_64 = arith.constant 5.000000e-01 : f32
    %434 = vector.broadcast %cst_64 : f32 to vector<8x96xf32>
    %435 = arith.mulf %434, %433 : vector<8x96xf32>
    %436 = math.tanh %435 : vector<8x96xf32>
    %cst_65 = arith.constant 1.000000e+00 : f32
    %437 = vector.broadcast %cst_65 : f32 to vector<8x96xf32>
    %438 = arith.addf %436, %437 : vector<8x96xf32>
    %cst_66 = arith.constant 5.000000e-01 : f32
    %439 = vector.broadcast %cst_66 : f32 to vector<8x96xf32>
    %440 = arith.mulf %439, %438 : vector<8x96xf32>
    %441 = vector.extract_strided_slice %440 {offsets = [0, 0], sizes = [8, 32], strides = [1, 1]} : vector<8x96xf32> to vector<8x32xf32>
    %442 = vector.extract_strided_slice %440 {offsets = [0, 32], sizes = [8, 32], strides = [1, 1]} : vector<8x96xf32> to vector<8x32xf32>
    %443 = vector.extract_strided_slice %440 {offsets = [0, 64], sizes = [8, 32], strides = [1, 1]} : vector<8x96xf32> to vector<8x32xf32>
    %444 = vector.extract_strided_slice %432 {offsets = [0, 96], sizes = [8, 32], strides = [1, 1]} : vector<8x128xf32> to vector<8x32xf32>
    %445 = math.tanh %444 : vector<8x32xf32>
    %446 = arith.mulf %442, %401 : vector<8x32xf32>
    %447 = arith.mulf %441, %445 : vector<8x32xf32>
    %448 = arith.addf %446, %447 : vector<8x32xf32>
    %449 = math.tanh %448 : vector<8x32xf32>
    %450 = arith.mulf %443, %449 : vector<8x32xf32>
    %451 = vector.shape_cast %423 : vector<8x1xi1> to vector<8x1xi1>
    %452 = vector.broadcast %451 : vector<8x1xi1> to vector<8x32xi1>
    %453 = arith.select %452, %450, %398 : vector<8x32xi1>, vector<8x32xf32>
    %454 = arith.truncf %453 : vector<8x32xf32> to vector<8x32xbf16>
    %c0_67 = arith.constant 0 : index
    %c0_68 = arith.constant 0 : index
    %455 = vector.load %arg5[%c0_67, %c0_68] : memref<32x128xbf16, #tpu.memory_space<vmem>>, vector<32x128xbf16>
    %cst_69 = arith.constant dense<0.000000e+00> : vector<8x128xf32>
    %456 = tpu.matmul %454, %455, %cst_69 {dimension_numbers = #tpu.dot_dimension_numbers<[1], [0], [0], [1], [0, 0, 1, 1], [], []>} : vector<8x32xbf16>, vector<32x128xbf16>, vector<8x128xf32> -> vector<8x128xf32>
    %c0_70 = arith.constant 0 : index
    %c0_71 = arith.constant 0 : index
    %457 = vector.load %arg6[%c0_70, %c0_71] : memref<1x128xf32, #tpu.memory_space<vmem>>, vector<1x128xf32>
    %458 = vector.broadcast %457 : vector<1x128xf32> to vector<8x128xf32>
    %459 = arith.addf %456, %458 : vector<8x128xf32>
    %c0_72 = arith.constant 0 : index
    %c0_73 = arith.constant 0 : index
    %460 = vector.load %arg7[%c0_72, %c0_73] : memref<8x128xf32, #tpu.memory_space<vmem>>, vector<8x128xf32>
    tpu.vector_store %arg7[%c0_72, %c0_73], %459 {strides = array<i32>} : memref<8x128xf32, #tpu.memory_space<vmem>>, vector<8x128xf32>,
    return
  }
}

</mosaic_0001>

<bundles_post_ra>
// kernel: tpu_custom_call.1
= control target key start
LH: loop header
LB: loop body
LE: loop exit
PB: predicated region body
PF: predicated region fallthrough
CT: control target
= control target key end

     0   :  { %12 = vsyncpa [#allocation3], 0  ;;  %s1916_s0 = inlined_call_operand.vmem [shape: bf16[64,16], index: 0, kind: input, shape index: {}]   ;;  %s1917_s1 = inlined_call_operand.vmem [shape: s32[8,1], index: 1, kind: input, shape index: {}]   ;;  %s1918_s2 = inlined_call_operand.vmem [shape: bf16[16,128], index: 2, kind: input, shape index: {}]   ;;  %s1919_s3 = inlined_call_operand.hbm [shape: bf16[64,256], index: 3, kind: input, shape index: {}]   ;;  %s1920_s4 = inlined_call_operand.vmem [shape: f32[2,128], index: 4, kind: input, shape index: {}]   ;;  %s1921_s5 = inlined_call_operand.vmem [shape: bf16[32,128], index: 5, kind: input, shape index: {}]   ;;  %s1922_s6 = inlined_call_operand.vmem [shape: f32[1,128], index: 6, kind: input, shape index: {}]   ;;  %s1923_s7 = inlined_call_operand.hbm [shape: f32[8,128], index: 7, kind: output, shape index: {}]  }
   0x1   :  { %13 = vsyncpa [#allocation4], 0  ;;  %s1393_s24 = smov [#allocation2]   ;;  %s1345_s28 = scalar_lea.hbm %s1919_s3, 1024 }
   0x2   :  { %s25_s25 = sshll.u32 %s1393_s24, 4  ;;  %p1346_p0 = scmp.ne.s32.totalorder %s1919_s3, %s1345_s28  ;;  %s26_s25 = int_to_ptr.vmem [resolvable:$true] %s25_s25 }
   0x3   :  { %p1349_p1 = scmp.lt.u32.totalorder %s1345_s28, %s1919_s3 }
   0x5   :  { %p1351_p2 = pnand %p1349_p1, %p1346_p0 }
   0x7   :  { %1354 = shalt.err (!%p1351_p2)
}
   0x8   :  { %s1355_s10 = scalar_lea.vmem %s26_s25, 1024  ;;  %p1360_p4 = scmp.lt.s32.totalorder %s26_s25, %s26_s25 }
   0x9   :  { %p1356_p3 = scmp.ne.s32.totalorder %s26_s25, %s1355_s10  ;;  %p1361_p5 = scmp.lt.s32.totalorder %s1355_s10, %s1355_s10 }
   0xb   :  { %p1362_p6 = por %p1361_p5, %p1360_p4 }
   0xd   :  { %p1363_p7 = pnand %p1362_p6, %p1356_p3 }
   0xf   :  { %1366 = shalt.err (!%p1363_p7)
}
  0x10   :  { %s1394_s11 = smov 128   ;;  %s1395_s12 = smov 8  }
  0x11   :  { %31 = dma.hbm_to_vmem [thread:$0]  %s1919_s3, 1024, %s26_s25, [#allocation3], %s1394_s11, %s1394_s11, %s1395_s12  }
  0x12   :  { %1389 = dma.done.wait [#allocation3], 1024  }
  0x13   :  { %1390 = vsyncadd [#allocation3], 4294966272  ;;  %v1230_v0 = vld [vmem:[%s1918_s2] sm:$0xff]   ;;  %vm93_vm0 = vcmask 130048   ;;  %v1232_v2 = vld [vmem:[%s1916_s0 + $0x8] sm:$0xff]   ;;  %s1396_s2 = smov 32  }
  0x14   :  { %v1231_v1 = vld [vmem:[%s1916_s0] sm:$0xff]   ;;  %1200 = vmatprep.subr.bf16.mxu0 %v1230_v0  ;;  %v1483_v18 = vld [vmem:[#allocation2 + $0x14] ss:$8 sps:$4 sm:$0xff]   ;;  %v1488_v19 = vld [vmem:[#allocation2 + $0x10] ss:$8 sps:$4 sm:$0xff]   ;;  %s1397_s22 = smov 64  }
  0x15   :  { %1201 = vmatpush3.bf16.msra.mxu0 %v1230_v0  ;;  %1202 = vmatprep.mubr.msk.bf16.mxu0 %vm93_vm0, %v1231_v1  ;;  %v1469_v3 = vld [vmem:[%s1920_s4] ss:$0 sm:$0xff]  ;;  %v1479_v16 = vld [vmem:[#allocation2 + $0x4] ss:$8 sps:$4 sm:$0xff]   ;;  %v1505_v23 = vld [vmem:[#allocation2 + $0x34] ss:$8 sps:$4 sm:$0xff]  }
  0x16   :  { %v1481_v17 = vld [vmem:[#allocation2] ss:$8 sps:$4 sm:$0xff]   ;;  %238 = vmatprep.subr.bf16.mxu1 %v1479_v16  ;;  %348 = vmatprep.subr.bf16.mxu0 %v1479_v16  ;;  %v1492_v20 = vld [vmem:[#allocation2 + $0x24] ss:$8 sps:$4 sm:$0xff]   ;;  %v1507_v24 = vld [vmem:[#allocation2 + $0x30] ss:$8 sps:$4 sm:$0xff]  }
  0x17   :  { %239 = vmatpush1.bf16.msra.mxu1 %v1481_v17  ;;  %v1496_v21 = vld [vmem:[#allocation2 + $0x20] ss:$8 sps:$4 sm:$0xff]   ;;  %v1398_v25 = vmov 0   ;;  %vm191_vm1 = vcmask 261120   ;;  %vm234_vm2 = vcmask 523264   ;;  %v1245_v60 = vld [vmem:[%s1916_s0 + $0x10] sm:$0xff]  }
  0x18   :  { %1203 = vmatmul.mubr.msk.bf16.vlgmr.msra.gmra.mrb[0].mxu0 %vm93_vm0, %v1232_v2  ;;  %240 = vmatprep.subr.bf16.mxu1 %v1483_v18  ;;  %v1538_v32 = vld [vmem:[%s1920_s4 + $0x1] ss:$0 sm:$0xff]  ;;  %v1246_v61 = vld [vmem:[%s1916_s0 + $0x18] sm:$0xff]   ;;  %s1399_s29 = smov 96  }
  0x19   :  { %349 = vmatpush1.bf16.msra.mxu0 %v1481_v17  ;;  %270 = vmatprep.mubr.bf16.mxu1 %v1398_v25  ;;  %v1548_v48 = vld [vmem:[%s1917_s1] sm:$0xff] }
  0x1a   :  { %350 = vmatprep.subr.bf16.mxu0 %v1483_v18  ;;  %1228 = vset.pattern.permute.xlu1 %v1398_v25  ;;  %vm327_vm3 = vcmp.gt.s32.totalorder %v1548_v48, 1  ;;  %vm441_vm5 = vcmp.gt.s32.totalorder %v1548_v48, 2  ;;  %vm551_vm7 = vcmp.gt.s32.totalorder %v1548_v48, 3  ;;  %vm661_vm9 = vcmp.gt.s32.totalorder %v1548_v48, 4 }
  0x1b   :  { %241 = vmatpush1.bf16.msra.mxu1 %v1488_v19  ;;  %1229 = vset.pattern.permute.xlu0 %v1398_v25  ;;  %v328_v55 = vsel %vm327_vm3, 1, %v1398_v25  ;;  %vm771_vm11 = vcmp.gt.s32.totalorder %v1548_v48, 5  ;;  %vm881_vm13 = vcmp.gt.s32.totalorder %v1548_v48, 6  ;;  %vm991_vm15 = vcmp.gt.s32.totalorder %v1548_v48, 7 }
  0x1c   :  { %242 = vmatprep.subr.bf16.mxu1 %v1492_v20  ;;  %1206 = vmatprep.mubr.msk.bf16.mxu0 %vm93_vm0, %v1245_v60 }
  0x1d   :  { %351 = vmatpush1.bf16.msra.mxu0 %v1488_v19 }
  0x1e   :  { %352 = vmatprep.subr.bf16.mxu0 %v1492_v20 }
  0x1f   :  { %243 = vmatpush1.bf16.msra.mxu1 %v1496_v21 }
  0x20   :  { %244 = vmatprep.subr.bf16.mxu1 %v1505_v23  ;;  %1207 = vmatmul.mubr.msk.bf16.gmra.mrb[4].mxu0 %vm93_vm0, %v1246_v61 }
  0x21   :  { %353 = vmatpush1.bf16.msra.mxu0 %v1496_v21  ;;  %380 = vmatprep.mubr.bf16.mxu0 %v1398_v25 }
  0x22   :  { %354 = vmatprep.subr.bf16.mxu0 %v1505_v23 }
  0x23   :  { %245 = vmatpush1.bf16.msra.mxu1 %v1507_v24 }
  0x24   :  { %462 = vmatprep.subr.bf16.mxu1 %v1479_v16 }
  0x25   :  { %355 = vmatpush1.bf16.msra.mxu0 %v1507_v24 }
  0x26   :  { %572 = vmatprep.subr.bf16.mxu0 %v1479_v16 }
  0xeb   :  { %v1471_v4 = vpop.f32.mrb[0].mxu0 }
  0xec   :  { %v140_v5 = vpop.f32.mrb[1].mxu0 }
  0xed   :  { %v141_v6 = vadd.f32 %v1469_v3, %v140_v5  ;;  %v1474_v7 = vpop.f32.mrb[2].mxu0 }
  0xee   :  { %v1476_v8 = vpop.f32.mrb[3].mxu0 }
  0xef   :  { %1249 = vtanh.f32 %v141_v6  ;;  %v171_v10 = vmul.f32 0.5, %v141_v6  ;;  %v144_v31 = vadd.f32 %v1469_v3, %v1476_v8 }
  0xf1   :  { %1251 = vtanh.f32 %v171_v10 }
  0xf3   :  { %v1582_v8 = vpop.f32.mrb[4].mxu0 }
  0xf9   :  { %v1250_v9 = vpop.eup %1249 }
  0xfa   :  { %177 = vrot.lane.b32.xlu0 %v1250_v9, %s1396_s2  ;;  %v1584_v9 = vpop.f32.mrb[5].mxu0 }
  0xfb   :  { %v1252_v11 = vpop.eup %1251  ;;  %v1586_v10 = vpop.f32.mrb[6].mxu0 }
  0xfc   :  { %v173_v12 = vadd.f32 1.0, %v1252_v11  ;;  %v1588_v11 = vpop.f32.mrb[7].mxu0 }
  0xfe   :  { %v174_v13 = vmul.f32 0.5, %v173_v12 }
 0x16c   :  { %v178_v14 = vpop.permute.xlu0 %177 }
 0x16d   :  { %v180_v15 = vmul.f32 %v178_v14, %v174_v13 }
 0x16f   :  { %1253 = vtanh.f32 %v180_v15 }
 0x179   :  { %v1254_v22 = vpop.eup %1253 }
 0x17a   :  { %183 = vrot.lane.b32.xlu0 %v1254_v22, %s1397_s22  ;;  %v149_v22 = vadd.f32 %v1471_v4, %v1469_v3 }
 0x17e   :  { %307 = vrot.lane.b32.xlu0 %v180_v15, %s1396_s2 }
 0x1ec   :  { %v184_v26 = vpop.permute.xlu0 %183 }
 0x1ed   :  { %v1518_v27 = vmul.f32 %v184_v26, %v174_v13 }
 0x1ef   :  { %188 = vrot.lane.b32.xlu1 %v1518_v27, %s1397_s22 }
 0x1f0   :  { %v1543_v47 = vpop.permute.xlu0 %307 }
 0x261   :  { %v189_v28 = vpop.permute.xlu1 %188 }
 0x262   :  { %v192_v29 = vsel %vm191_vm1, %v189_v28, 0.0 }
 0x263   :  { %v193_v30 = vpack.c.bf16 %v192_v29, %v192_v29 }
 0x265   :  { %1179 = vmatmul.mubr.msk.bf16.vlgmr.msra.gmra.mrb[0].mxu1 %vm234_vm2, %v193_v30 }
 0x266   :  { %463 = vmatpush1.bf16.msra.mxu1 %v1481_v17  ;;  %494 = vmatprep.mubr.bf16.mxu1 %v1398_v25 }
 0x267   :  { %464 = vmatprep.subr.bf16.mxu1 %v1483_v18 }
 0x26a   :  { %465 = vmatpush1.bf16.msra.mxu1 %v1488_v19 }
 0x26b   :  { %466 = vmatprep.subr.bf16.mxu1 %v1492_v20 }
 0x26e   :  { %467 = vmatpush1.bf16.msra.mxu1 %v1496_v21 }
 0x26f   :  { %468 = vmatprep.subr.bf16.mxu1 %v1505_v23 }
 0x272   :  { %469 = vmatpush1.bf16.msra.mxu1 %v1507_v24 }
 0x273   :  { %682 = vmatprep.subr.bf16.mxu1 %v1479_v16 }
 0x338   :  { %v272_v33 = vpop.f32.mrb[0].mxu1 }
 0x339   :  { %v300_v34 = vadd.f32 %v272_v33, %v144_v31  ;;  %v274_v35 = vpop.f32.mrb[1].mxu1 }
 0x33a   :  { %v283_v36 = vadd.f32 %v1538_v32, %v274_v35  ;;  %v276_v37 = vpop.f32.mrb[2].mxu1 }
 0x33b   :  { %1255 = vtanh.f32 %v300_v34  ;;  %v277_v38 = vpop.f32.mrb[3].mxu1  ;;  %v301_v41 = vmul.f32 0.5, %v300_v34 }
 0x33c   :  { %1257 = vtanh.f32 %v283_v36  ;;  %v284_v42 = vmul.f32 0.5, %v283_v36 }
 0x33d   :  { %1259 = vtanh.f32 %v301_v41 }
 0x33e   :  { %1261 = vtanh.f32 %v284_v42 }
 0x345   :  { %v1256_v39 = vpop.eup %1255 }
 0x346   :  { %v1258_v40 = vpop.eup %1257  ;;  %312 = vrot.lane.b32.xlu1 %v1256_v39, %s1396_s2 }
 0x347   :  { %290 = vrot.lane.b32.xlu0 %v1258_v40, %s1396_s2  ;;  %v1260_v43 = vpop.eup %1259 }
 0x348   :  { %v1262_v44 = vpop.eup %1261  ;;  %v303_v45 = vadd.f32 1.0, %v1260_v43 }
 0x349   :  { %v286_v46 = vadd.f32 1.0, %v1262_v44 }
 0x34a   :  { %v304_v49 = vmul.f32 0.5, %v303_v45 }
 0x34b   :  { %v287_v51 = vmul.f32 0.5, %v286_v46  ;;  %v442_v46 = vsel %vm441_vm5, 1, %v1398_v25 }
 0x34c   :  { %v310_v57 = vmul.f32 %v1543_v47, %v304_v49 }
 0x3b8   :  { %v313_v50 = vpop.permute.xlu1 %312 }
 0x3b9   :  { %v315_v52 = vmul.f32 %v313_v50, %v304_v49  ;;  %v291_v53 = vpop.permute.xlu0 %290 }
 0x3ba   :  { %v293_v54 = vmul.f32 %v291_v53, %v287_v51 }
 0x3bb   :  { %317 = vrot.lane.b32.xlu1 %v315_v52, %s1396_s2 }
 0x3bc   :  { %1263 = vtanh.f32 %v293_v54 }
 0x3bf   :  { %330 = vperm.xlu1 %1228, %v328_v55  }
 0x3c6   :  { %v1264_v56 = vpop.eup %1263 }
 0x3c7   :  { %296 = vrot.lane.b32.xlu1 %v1264_v56, %s1397_s22 }
 0x42d   :  { %v318_v58 = vpop.permute.xlu1 %317 }
 0x42e   :  { %v1555_v59 = vadd.f32 %v318_v58, %v310_v57 }
 0x430   :  { %1265 = vtanh.f32 %v1555_v59 }
 0x43a   :  { %v1266_v62 = vpop.eup %1265 }
 0x43b   :  { %323 = vrot.lane.b32.xlu0 %v1266_v62, %s1396_s2 }
 0x43e   :  { %v1568_v63 = vpop.permute.xlu1 %330 }
 0x43f   :  { %vm332_vm4 = vcmp.eq.s32.totalorder %v1568_v63, 1 }
 0x440   :  { %v1617_v50 = vsel %vm332_vm4, %v1555_v59, %v1543_v47 }
 0x442   :  { %v297_v0 = vpop.permute.xlu1 %296 }
 0x443   :  { %v1570_v1 = vmul.f32 %v297_v0, %v287_v51 }
 0x445   :  { %340 = vrot.lane.b32.xlu1 %v1570_v1, %s1399_s29 }
 0x4ad   :  { %v324_v2 = vpop.permute.xlu0 %323 }
 0x4ae   :  { %v326_v5 = vmul.f32 %v324_v2, %v304_v49 }
 0x4b0   :  { %v1578_v6 = vsel %vm332_vm4, %v326_v5, %v1518_v27 }
 0x4b1   :  { %336 = vrot.lane.b32.xlu0 %v1578_v6, %s1397_s22 }
 0x4b7   :  { %v341_v12 = vpop.permute.xlu1 %340 }
 0x523   :  { %v337_v13 = vpop.permute.xlu0 %336 }
 0x524   :  { %v343_v14 = vsel %vm191_vm1, %v337_v13, %v341_v12 }
 0x525   :  { %v344_v15 = vpack.c.bf16 %v343_v14, %v343_v14 }
 0x527   :  { %1181 = vmatmul.mubr.msk.bf16.vlgmr.msra.gmra.mrb[8].mxu0 %vm234_vm2, %v344_v15 }
 0x528   :  { %573 = vmatpush1.bf16.msra.mxu0 %v1481_v17  ;;  %604 = vmatprep.mubr.bf16.mxu0 %v1398_v25 }
 0x529   :  { %574 = vmatprep.subr.bf16.mxu0 %v1483_v18 }
 0x52c   :  { %575 = vmatpush1.bf16.msra.mxu0 %v1488_v19 }
 0x52d   :  { %576 = vmatprep.subr.bf16.mxu0 %v1492_v20 }
 0x530   :  { %577 = vmatpush1.bf16.msra.mxu0 %v1496_v21 }
 0x531   :  { %578 = vmatprep.subr.bf16.mxu0 %v1505_v23 }
 0x534   :  { %579 = vmatpush1.bf16.msra.mxu0 %v1507_v24 }
 0x535   :  { %792 = vmatprep.subr.bf16.mxu0 %v1479_v16 }
 0x5fa   :  { %v382_v26 = vpop.f32.mrb[8].mxu0 }
 0x5fb   :  { %v418_v27 = vadd.f32 %v382_v26, %v149_v22  ;;  %v384_v28 = vpop.f32.mrb[9].mxu0 }
 0x5fc   :  { %v389_v29 = vadd.f32 %v1538_v32, %v384_v28  ;;  %v386_v30 = vpop.f32.mrb[10].mxu0 }
 0x5fd   :  { %1267 = vtanh.f32 %v418_v27  ;;  %v387_v31 = vpop.f32.mrb[11].mxu0  ;;  %v419_v35 = vmul.f32 0.5, %v418_v27 }
 0x5fe   :  { %1269 = vtanh.f32 %v389_v29  ;;  %v390_v36 = vmul.f32 0.5, %v389_v29 }
 0x5ff   :  { %1271 = vtanh.f32 %v419_v35 }
 0x600   :  { %1273 = vtanh.f32 %v390_v36 }
 0x607   :  { %v1268_v33 = vpop.eup %1267 }
 0x608   :  { %v1270_v34 = vpop.eup %1269  ;;  %426 = vrot.lane.b32.xlu1 %v1268_v33, %s1396_s2 }
 0x609   :  { %401 = vrot.lane.b32.xlu0 %v1270_v34, %s1396_s2  ;;  %v1272_v4 = vpop.eup %1271 }
 0x60a   :  { %v1274_v37 = vpop.eup %1273  ;;  %v421_v38 = vadd.f32 1.0, %v1272_v4 }
 0x60b   :  { %v392_v39 = vadd.f32 1.0, %v1274_v37 }
 0x60c   :  { %v422_v40 = vmul.f32 0.5, %v421_v38 }
 0x60d   :  { %396 = vrot.lane.b32.xlu0 %v293_v54, %s1396_s2  ;;  %v393_v42 = vmul.f32 0.5, %v392_v39 }
 0x60e   :  { %v424_v51 = vmul.f32 %v422_v40, %v1617_v50 }
 0x67a   :  { %v427_v41 = vpop.permute.xlu1 %426 }
 0x67b   :  { %v429_v43 = vmul.f32 %v427_v41, %v422_v40  ;;  %v402_v44 = vpop.permute.xlu0 %401 }
 0x67c   :  { %v404_v45 = vmul.f32 %v402_v44, %v393_v42 }
 0x67d   :  { %431 = vrot.lane.b32.xlu0 %v429_v43, %s1396_s2 }
 0x67e   :  { %406 = vrot.lane.b32.xlu1 %v404_v45, %s1396_s2 }
 0x67f   :  { %v1611_v49 = vpop.permute.xlu0 %396 }
 0x680   :  { %v399_v52 = vmul.f32 %v1611_v49, %v393_v42 }
 0x682   :  { %444 = vperm.xlu1 %1228, %v442_v46  }
 0x6ef   :  { %v432_v53 = vpop.permute.xlu0 %431 }
 0x6f0   :  { %v1621_v54 = vadd.f32 %v432_v53, %v424_v51  ;;  %v407_v55 = vpop.permute.xlu1 %406 }
 0x6f1   :  { %v1623_v56 = vadd.f32 %v407_v55, %v399_v52 }
 0x6f2   :  { %1275 = vtanh.f32 %v1621_v54 }
 0x6f3   :  { %1277 = vtanh.f32 %v1623_v56  ;;  %v1670_v43 = vsel %vm332_vm4, %v1623_v56, %v1611_v49 }
 0x6fc   :  { %v1276_v57 = vpop.eup %1275 }
 0x6fd   :  { %v1278_v58 = vpop.eup %1277  ;;  %437 = vrot.lane.b32.xlu1 %v1276_v57, %s1396_s2 }
 0x6fe   :  { %412 = vrot.lane.b32.xlu0 %v1278_v58, %s1396_s2 }
 0x701   :  { %v1629_v47 = vpop.permute.xlu1 %444 }
 0x702   :  { %vm446_vm6 = vcmp.eq.s32.totalorder %v1629_v47, 1 }
 0x703   :  { %v1677_v45 = vsel %vm446_vm6, %v1621_v54, %v1617_v50 }
 0x76f   :  { %v438_v59 = vpop.permute.xlu1 %437 }
 0x770   :  { %v440_v60 = vmul.f32 %v438_v59, %v422_v40  ;;  %v413_v61 = vpop.permute.xlu0 %412 }
 0x771   :  { %v415_v62 = vmul.f32 %v413_v61, %v393_v42  ;;  %v552_v42 = vsel %vm551_vm7, 1, %v1398_v25 }
 0x772   :  { %v1635_v0 = vsel %vm446_vm6, %v440_v60, %v1578_v6 }
 0x773   :  { %450 = vrot.lane.b32.xlu0 %v1635_v0, %s1397_s22  ;;  %v1642_v2 = vsel %vm332_vm4, %v415_v62, %v1570_v1  ;;  %v152_v1 = vadd.f32 %v1474_v7, %v1469_v3 }
 0x774   :  { %454 = vrot.lane.b32.xlu1 %v1642_v2, %s1399_s29 }
 0x7e5   :  { %v451_v5 = vpop.permute.xlu0 %450 }
 0x7e6   :  { %v455_v12 = vpop.permute.xlu1 %454 }
 0x7e7   :  { %v457_v13 = vsel %vm191_vm1, %v451_v5, %v455_v12 }
 0x7e8   :  { %v458_v14 = vpack.c.bf16 %v457_v13, %v457_v13 }
 0x7ea   :  { %1182 = vmatmul.mubr.msk.bf16.vlgmr.msra.gmra.mrb[4].mxu1 %vm234_vm2, %v458_v14 }
 0x7eb   :  { %683 = vmatpush1.bf16.msra.mxu1 %v1481_v17  ;;  %714 = vmatprep.mubr.bf16.mxu1 %v1398_v25 }
 0x7ec   :  { %684 = vmatprep.subr.bf16.mxu1 %v1483_v18 }
 0x7ef   :  { %685 = vmatpush1.bf16.msra.mxu1 %v1488_v19 }
 0x7f0   :  { %686 = vmatprep.subr.bf16.mxu1 %v1492_v20 }
 0x7f3   :  { %687 = vmatpush1.bf16.msra.mxu1 %v1496_v21 }
 0x7f4   :  { %688 = vmatprep.subr.bf16.mxu1 %v1505_v23 }
 0x7f7   :  { %689 = vmatpush1.bf16.msra.mxu1 %v1507_v24 }
 0x7f8   :  { %902 = vmatprep.subr.bf16.mxu1 %v1479_v16 }
 0x8bd   :  { %v496_v6 = vpop.f32.mrb[4].mxu1 }
 0x8be   :  { %v528_v15 = vadd.f32 %v496_v6, %v152_v1  ;;  %v498_v22 = vpop.f32.mrb[5].mxu1 }
 0x8bf   :  { %v503_v26 = vadd.f32 %v1538_v32, %v498_v22  ;;  %v500_v27 = vpop.f32.mrb[6].mxu1 }
 0x8c0   :  { %1279 = vtanh.f32 %v528_v15  ;;  %v501_v28 = vpop.f32.mrb[7].mxu1  ;;  %v529_v31 = vmul.f32 0.5, %v528_v15 }
 0x8c1   :  { %1281 = vtanh.f32 %v503_v26  ;;  %v504_v33 = vmul.f32 0.5, %v503_v26 }
 0x8c2   :  { %1283 = vtanh.f32 %v529_v31 }
 0x8c3   :  { %1285 = vtanh.f32 %v504_v33 }
 0x8ca   :  { %v1280_v29 = vpop.eup %1279 }
 0x8cb   :  { %v1282_v30 = vpop.eup %1281  ;;  %536 = vrot.lane.b32.xlu1 %v1280_v29, %s1396_s2 }
 0x8cc   :  { %511 = vrot.lane.b32.xlu0 %v1282_v30, %s1396_s2  ;;  %v1284_v7 = vpop.eup %1283 }
 0x8cd   :  { %v1286_v34 = vpop.eup %1285  ;;  %v531_v35 = vadd.f32 1.0, %v1284_v7 }
 0x8ce   :  { %v506_v36 = vadd.f32 1.0, %v1286_v34 }
 0x8cf   :  { %v532_v4 = vmul.f32 0.5, %v531_v35 }
 0x8d0   :  { %v507_v38 = vmul.f32 0.5, %v506_v36 }
 0x8d1   :  { %v534_v52 = vmul.f32 %v532_v4, %v1677_v45 }
 0x8d2   :  { %v509_v44 = vmul.f32 %v507_v38, %v1670_v43 }
 0x93d   :  { %v537_v37 = vpop.permute.xlu1 %536 }
 0x93e   :  { %v539_v39 = vmul.f32 %v537_v37, %v532_v4  ;;  %v512_v40 = vpop.permute.xlu0 %511 }
 0x93f   :  { %v514_v41 = vmul.f32 %v512_v40, %v507_v38 }
 0x940   :  { %541 = vrot.lane.b32.xlu1 %v539_v39, %s1396_s2 }
 0x941   :  { %516 = vrot.lane.b32.xlu0 %v514_v41, %s1396_s2 }
 0x945   :  { %554 = vperm.xlu0 %1229, %v552_v42  }
 0x9b2   :  { %v542_v46 = vpop.permute.xlu1 %541 }
 0x9b3   :  { %v517_v51 = vpop.permute.xlu0 %516  ;;  %v1682_v55 = vadd.f32 %v542_v46, %v534_v52 }
 0x9b4   :  { %v1680_v53 = vadd.f32 %v517_v51, %v509_v44 }
 0x9b6   :  { %1287 = vtanh.f32 %v1680_v53  ;;  %v1736_v39 = vsel %vm446_vm6, %v1680_v53, %v1670_v43 }
 0x9b7   :  { %1289 = vtanh.f32 %v1682_v55 }
 0x9c0   :  { %v1288_v63 = vpop.eup %1287 }
 0x9c1   :  { %522 = vrot.lane.b32.xlu1 %v1288_v63, %s1396_s2  ;;  %v1290_v49 = vpop.eup %1289 }
 0x9c4   :  { %v1688_v56 = vpop.permute.xlu0 %554 }
 0x9c5   :  { %547 = vrot.lane.b32.xlu1 %v1290_v49, %s1396_s2  ;;  %vm556_vm8 = vcmp.eq.s32.totalorder %v1688_v56, 1 }
 0x9c6   :  { %v1729_v37 = vsel %vm556_vm8, %v1682_v55, %v1677_v45 }
 0xa33   :  { %v523_v50 = vpop.permute.xlu1 %522 }
 0xa34   :  { %v525_v54 = vmul.f32 %v523_v50, %v507_v38 }
 0xa36   :  { %v1693_v57 = vsel %vm446_vm6, %v525_v54, %v1642_v2 }
 0xa37   :  { %564 = vrot.lane.b32.xlu1 %v1693_v57, %s1399_s29  ;;  %v548_v58 = vpop.permute.xlu1 %547 }
 0xa38   :  { %v550_v59 = vmul.f32 %v548_v58, %v532_v4  ;;  %v662_v4 = vsel %vm661_vm9, 1, %v1398_v25 }
 0xa3a   :  { %v1701_v60 = vsel %vm556_vm8, %v550_v59, %v1635_v0  ;;  %v157_v0 = vadd.f32 %v1469_v3, %v1584_v9 }
 0xa3b   :  { %560 = vrot.lane.b32.xlu0 %v1701_v60, %s1397_s22 }
 0xaa9   :  { %v565_v61 = vpop.permute.xlu1 %564 }
 0xaad   :  { %v561_v62 = vpop.permute.xlu0 %560 }
 0xaae   :  { %v567_v2 = vsel %vm191_vm1, %v561_v62, %v565_v61 }
 0xaaf   :  { %v568_v5 = vpack.c.bf16 %v567_v2, %v567_v2 }
 0xab1   :  { %1183 = vmatmul.mubr.msk.bf16.vlgmr.msra.gmra.mrb[12].mxu0 %vm234_vm2, %v568_v5 }
 0xab2   :  { %793 = vmatpush1.bf16.msra.mxu0 %v1481_v17  ;;  %824 = vmatprep.mubr.bf16.mxu0 %v1398_v25 }
 0xab3   :  { %794 = vmatprep.subr.bf16.mxu0 %v1483_v18 }
 0xab6   :  { %795 = vmatpush1.bf16.msra.mxu0 %v1488_v19 }
 0xab7   :  { %796 = vmatprep.subr.bf16.mxu0 %v1492_v20 }
 0xaba   :  { %797 = vmatpush1.bf16.msra.mxu0 %v1496_v21 }
 0xabb   :  { %798 = vmatprep.subr.bf16.mxu0 %v1505_v23 }
 0xabe   :  { %799 = vmatpush1.bf16.msra.mxu0 %v1507_v24 }
 0xabf   :  { %1011 = vmatprep.subr.bf16.mxu0 %v1479_v16 }
 0xb84   :  { %v606_v12 = vpop.f32.mrb[12].mxu0 }
 0xb85   :  { %v638_v13 = vadd.f32 %v606_v12, %v157_v0  ;;  %v608_v14 = vpop.f32.mrb[13].mxu0 }
 0xb86   :  { %v613_v1 = vadd.f32 %v1538_v32, %v608_v14  ;;  %v610_v6 = vpop.f32.mrb[14].mxu0 }
 0xb87   :  { %1291 = vtanh.f32 %v638_v13  ;;  %v611_v15 = vpop.f32.mrb[15].mxu0  ;;  %v639_v27 = vmul.f32 0.5, %v638_v13 }
 0xb88   :  { %1293 = vtanh.f32 %v613_v1  ;;  %v614_v16 = vmul.f32 0.5, %v613_v1 }
 0xb89   :  { %1295 = vtanh.f32 %v639_v27 }
 0xb8a   :  { %1297 = vtanh.f32 %v614_v16 }
 0xb91   :  { %v1292_v22 = vpop.eup %1291 }
 0xb92   :  { %v1294_v26 = vpop.eup %1293  ;;  %646 = vrot.lane.b32.xlu1 %v1292_v22, %s1396_s2 }
 0xb93   :  { %621 = vrot.lane.b32.xlu0 %v1294_v26, %s1396_s2  ;;  %v1296_v9 = vpop.eup %1295 }
 0xb94   :  { %v1298_v28 = vpop.eup %1297  ;;  %v641_v29 = vadd.f32 1.0, %v1296_v9 }
 0xb95   :  { %v616_v30 = vadd.f32 1.0, %v1298_v28 }
 0xb96   :  { %v642_v31 = vmul.f32 0.5, %v641_v29 }
 0xb97   :  { %v617_v7 = vmul.f32 0.5, %v616_v30  ;;  %v772_v30 = vsel %vm771_vm11, 1, %v1398_v25 }
 0xb98   :  { %v644_v38 = vmul.f32 %v642_v31, %v1729_v37 }
 0xb99   :  { %v619_v41 = vmul.f32 %v617_v7, %v1736_v39 }
 0xc04   :  { %v647_v33 = vpop.permute.xlu1 %646 }
 0xc05   :  { %v649_v34 = vmul.f32 %v647_v33, %v642_v31  ;;  %v622_v35 = vpop.permute.xlu0 %621 }
 0xc06   :  { %v624_v36 = vmul.f32 %v622_v35, %v617_v7 }
 0xc07   :  { %651 = vrot.lane.b32.xlu1 %v649_v34, %s1396_s2 }
 0xc08   :  { %626 = vrot.lane.b32.xlu0 %v624_v36, %s1396_s2 }
 0xc0c   :  { %664 = vperm.xlu0 %1229, %v662_v4  }
 0xc79   :  { %v652_v40 = vpop.permute.xlu1 %651 }
 0xc7a   :  { %v1739_v42 = vadd.f32 %v652_v40, %v644_v38  ;;  %v627_v44 = vpop.permute.xlu0 %626 }
 0xc7b   :  { %v1741_v46 = vadd.f32 %v627_v44, %v619_v41 }
 0xc7c   :  { %1299 = vtanh.f32 %v1739_v42 }
 0xc7d   :  { %1301 = vtanh.f32 %v1741_v46 }
 0xc86   :  { %v1300_v45 = vpop.eup %1299 }
 0xc87   :  { %v1302_v51 = vpop.eup %1301  ;;  %657 = vrot.lane.b32.xlu0 %v1300_v45, %s1396_s2 }
 0xc88   :  { %632 = vrot.lane.b32.xlu1 %v1302_v51, %s1396_s2 }
 0xc8b   :  { %v1747_v47 = vpop.permute.xlu0 %664 }
 0xc8c   :  { %vm666_vm10 = vcmp.eq.s32.totalorder %v1747_v47, 1 }
 0xcf9   :  { %v658_v43 = vpop.permute.xlu0 %657 }
 0xcfa   :  { %v660_v52 = vmul.f32 %v658_v43, %v642_v31  ;;  %v633_v53 = vpop.permute.xlu1 %632  ;;  %v1787_v31 = vsel %vm666_vm10, %v1739_v42, %v1729_v37 }
 0xcfb   :  { %v635_v55 = vmul.f32 %v633_v53, %v617_v7  ;;  %v1794_v7 = vsel %vm556_vm8, %v1741_v46, %v1736_v39 }
 0xcfc   :  { %v1753_v63 = vsel %vm666_vm10, %v660_v52, %v1701_v60 }
 0xcfd   :  { %670 = vrot.lane.b32.xlu1 %v1753_v63, %s1397_s22  ;;  %v1760_v49 = vsel %vm556_vm8, %v635_v55, %v1693_v57  ;;  %v160_v57 = vadd.f32 %v1469_v3, %v1588_v11  ;;  %v165_v55 = vadd.f32 %v1582_v8, %v1469_v3 }
 0xcfe   :  { %674 = vrot.lane.b32.xlu0 %v1760_v49, %s1399_s29 }
 0xd6f   :  { %v671_v50 = vpop.permute.xlu1 %670 }
 0xd70   :  { %v675_v54 = vpop.permute.xlu0 %674 }
 0xd71   :  { %v677_v58 = vsel %vm191_vm1, %v671_v50, %v675_v54 }
 0xd72   :  { %v678_v59 = vpack.c.bf16 %v677_v58, %v677_v58 }
 0xd74   :  { %1184 = vmatmul.mubr.msk.bf16.vlgmr.msra.gmra.mrb[8].mxu1 %vm234_vm2, %v678_v59 }
 0xd75   :  { %903 = vmatpush1.bf16.msra.mxu1 %v1481_v17  ;;  %934 = vmatprep.mubr.bf16.mxu1 %v1398_v25 }
 0xd76   :  { %904 = vmatprep.subr.bf16.mxu1 %v1483_v18 }
 0xd79   :  { %905 = vmatpush1.bf16.msra.mxu1 %v1488_v19 }
 0xd7a   :  { %906 = vmatprep.subr.bf16.mxu1 %v1492_v20 }
 0xd7d   :  { %907 = vmatpush1.bf16.msra.mxu1 %v1496_v21 }
 0xd7e   :  { %908 = vmatprep.subr.bf16.mxu1 %v1505_v23 }
 0xd81   :  { %909 = vmatpush1.bf16.msra.mxu1 %v1507_v24 }
 0xe47   :  { %v716_v60 = vpop.f32.mrb[8].mxu1 }
 0xe48   :  { %v748_v61 = vadd.f32 %v716_v60, %v160_v57  ;;  %v718_v62 = vpop.f32.mrb[9].mxu1 }
 0xe49   :  { %v723_v2 = vadd.f32 %v1538_v32, %v718_v62  ;;  %v720_v5 = vpop.f32.mrb[10].mxu1 }
 0xe4a   :  { %1303 = vtanh.f32 %v748_v61  ;;  %v721_v0 = vpop.f32.mrb[11].mxu1  ;;  %v749_v14 = vmul.f32 0.5, %v748_v61 }
 0xe4b   :  { %1305 = vtanh.f32 %v723_v2  ;;  %v724_v1 = vmul.f32 0.5, %v723_v2  ;;  %v882_v0 = vsel %vm881_vm13, 1, %v1398_v25 }
 0xe4c   :  { %1307 = vtanh.f32 %v749_v14 }
 0xe4d   :  { %1309 = vtanh.f32 %v724_v1 }
 0xe54   :  { %v1304_v12 = vpop.eup %1303 }
 0xe55   :  { %v1306_v13 = vpop.eup %1305  ;;  %756 = vrot.lane.b32.xlu0 %v1304_v12, %s1396_s2 }
 0xe56   :  { %731 = vrot.lane.b32.xlu1 %v1306_v13, %s1396_s2  ;;  %v1308_v11 = vpop.eup %1307 }
 0xe57   :  { %v1310_v6 = vpop.eup %1309  ;;  %v751_v15 = vadd.f32 1.0, %v1308_v11 }
 0xe58   :  { %v726_v22 = vadd.f32 1.0, %v1310_v6 }
 0xe59   :  { %v752_v26 = vmul.f32 0.5, %v751_v15 }
 0xe5a   :  { %v727_v16 = vmul.f32 0.5, %v726_v22 }
 0xe5b   :  { %v754_v33 = vmul.f32 %v752_v26, %v1787_v31 }
 0xe5c   :  { %v729_v35 = vmul.f32 %v727_v16, %v1794_v7 }
 0xec7   :  { %v757_v27 = vpop.permute.xlu0 %756 }
 0xec8   :  { %v759_v9 = vmul.f32 %v757_v27, %v752_v26  ;;  %v732_v28 = vpop.permute.xlu1 %731 }
 0xec9   :  { %v734_v29 = vmul.f32 %v732_v28, %v727_v16 }
 0xeca   :  { %761 = vrot.lane.b32.xlu0 %v759_v9, %s1396_s2 }
 0xecb   :  { %736 = vrot.lane.b32.xlu1 %v734_v29, %s1396_s2 }
 0xecf   :  { %774 = vperm.xlu1 %1228, %v772_v30  }
 0xf3c   :  { %v762_v34 = vpop.permute.xlu0 %761 }
 0xf3d   :  { %v1797_v36 = vadd.f32 %v762_v34, %v754_v33  ;;  %v737_v4 = vpop.permute.xlu1 %736 }
 0xf3e   :  { %v1799_v38 = vadd.f32 %v737_v4, %v729_v35 }
 0xf3f   :  { %1311 = vtanh.f32 %v1797_v36 }
 0xf40   :  { %1313 = vtanh.f32 %v1799_v38  ;;  %v747_v14 = vsel %vm666_vm10, %v1799_v38, %v1794_v7 }
 0xf49   :  { %v1312_v37 = vpop.eup %1311 }
 0xf4a   :  { %v1314_v40 = vpop.eup %1313  ;;  %767 = vrot.lane.b32.xlu1 %v1312_v37, %s1396_s2 }
 0xf4b   :  { %742 = vrot.lane.b32.xlu0 %v1314_v40, %s1396_s2 }
 0xf4e   :  { %v1805_v56 = vpop.permute.xlu1 %774 }
 0xf4f   :  { %vm776_vm12 = vcmp.eq.s32.totalorder %v1805_v56, 1 }
 0xf50   :  { %v778_v12 = vsel %vm776_vm12, %v1797_v36, %v1787_v31  ;;  %v168_v36 = vadd.f32 %v1586_v10, %v1469_v3 }
 0xfbc   :  { %v768_v39 = vpop.permute.xlu1 %767 }
 0xfbd   :  { %v770_v41 = vmul.f32 %v768_v39, %v752_v26  ;;  %v743_v42 = vpop.permute.xlu0 %742 }
 0xfbe   :  { %v745_v44 = vmul.f32 %v743_v42, %v727_v16 }
 0xfbf   :  { %v1811_v46 = vsel %vm776_vm12, %v770_v41, %v1753_v63 }
 0xfc0   :  { %780 = vrot.lane.b32.xlu0 %v1811_v46, %s1397_s22  ;;  %v1818_v45 = vsel %vm666_vm10, %v745_v44, %v1760_v49 }
 0xfc1   :  { %784 = vrot.lane.b32.xlu1 %v1818_v45, %s1399_s29 }
0x1032   :  { %v781_v51 = vpop.permute.xlu0 %780 }
0x1033   :  { %v785_v43 = vpop.permute.xlu1 %784 }
0x1034   :  { %v787_v52 = vsel %vm191_vm1, %v781_v51, %v785_v43 }
0x1035   :  { %v788_v53 = vpack.c.bf16 %v787_v52, %v787_v52 }
0x1037   :  { %1185 = vmatmul.mubr.msk.bf16.vlgmr.msra.gmra.mrb[16].mxu0 %vm234_vm2, %v788_v53 }
0x1038   :  { %1012 = vmatpush1.bf16.msra.mxu0 %v1481_v17  ;;  %1043 = vmatprep.mubr.bf16.mxu0 %v1398_v25 }
0x1039   :  { %1013 = vmatprep.subr.bf16.mxu0 %v1483_v18 }
0x103c   :  { %1014 = vmatpush1.bf16.msra.mxu0 %v1488_v19 }
0x103d   :  { %1015 = vmatprep.subr.bf16.mxu0 %v1492_v20 }
0x1040   :  { %1016 = vmatpush1.bf16.msra.mxu0 %v1496_v21 }
0x1041   :  { %1017 = vmatprep.subr.bf16.mxu0 %v1505_v23 }
0x1044   :  { %1018 = vmatpush1.bf16.msra.mxu0 %v1507_v24 }
0x110a   :  { %v826_v63 = vpop.f32.mrb[16].mxu0 }
0x110b   :  { %v858_v49 = vadd.f32 %v826_v63, %v165_v55  ;;  %v828_v17 = vpop.f32.mrb[17].mxu0 }
0x110c   :  { %v833_v50 = vadd.f32 %v1538_v32, %v828_v17  ;;  %v830_v54 = vpop.f32.mrb[18].mxu0 }
0x110d   :  { %1315 = vtanh.f32 %v858_v49  ;;  %v831_v18 = vpop.f32.mrb[19].mxu0  ;;  %v859_v21 = vmul.f32 0.5, %v858_v49 }
0x110e   :  { %1317 = vtanh.f32 %v833_v50  ;;  %v834_v23 = vmul.f32 0.5, %v833_v50  ;;  %v992_v50 = vsel %vm991_vm15, 1, %v1398_v25 }
0x110f   :  { %1319 = vtanh.f32 %v859_v21 }
0x1110   :  { %1321 = vtanh.f32 %v834_v23 }
0x1117   :  { %v1316_v19 = vpop.eup %1315 }
0x1118   :  { %v1318_v20 = vpop.eup %1317  ;;  %866 = vrot.lane.b32.xlu1 %v1316_v19, %s1396_s2 }
0x1119   :  { %841 = vrot.lane.b32.xlu0 %v1318_v20, %s1396_s2  ;;  %v1320_v24 = vpop.eup %1319 }
0x111a   :  { %v1322_v8 = vpop.eup %1321  ;;  %v861_v58 = vadd.f32 1.0, %v1320_v24 }
0x111b   :  { %v836_v59 = vadd.f32 1.0, %v1322_v8 }
0x111c   :  { %v862_v57 = vmul.f32 0.5, %v861_v58 }
0x111d   :  { %v837_v61 = vmul.f32 0.5, %v836_v59 }
0x111e   :  { %v864_v13 = vmul.f32 %v862_v57, %v778_v12 }
0x111f   :  { %v839_v11 = vmul.f32 %v837_v61, %v747_v14 }
0x118a   :  { %v867_v60 = vpop.permute.xlu1 %866 }
0x118b   :  { %v869_v62 = vmul.f32 %v867_v60, %v862_v57  ;;  %v842_v2 = vpop.permute.xlu0 %841 }
0x118c   :  { %v844_v5 = vmul.f32 %v842_v2, %v837_v61 }
0x118d   :  { %871 = vrot.lane.b32.xlu1 %v869_v62, %s1396_s2 }
0x118e   :  { %846 = vrot.lane.b32.xlu0 %v844_v5, %s1396_s2 }
0x1192   :  { %884 = vperm.xlu0 %1229, %v882_v0  }
0x11ff   :  { %v872_v1 = vpop.permute.xlu1 %871 }
0x1200   :  { %v874_v6 = vadd.f32 %v872_v1, %v864_v13  ;;  %v847_v15 = vpop.permute.xlu0 %846 }
0x1201   :  { %v849_v22 = vadd.f32 %v847_v15, %v839_v11 }
0x1202   :  { %1323 = vtanh.f32 %v874_v6 }
0x1203   :  { %1325 = vtanh.f32 %v849_v22  ;;  %v857_v19 = vsel %vm776_vm12, %v849_v22, %v747_v14 }
0x120c   :  { %v1324_v26 = vpop.eup %1323 }
0x120d   :  { %v1326_v27 = vpop.eup %1325  ;;  %877 = vrot.lane.b32.xlu0 %v1324_v26, %s1396_s2 }
0x120e   :  { %852 = vrot.lane.b32.xlu1 %v1326_v27, %s1396_s2 }
0x1211   :  { %v1851_v16 = vpop.permute.xlu0 %884 }
0x1212   :  { %vm886_vm14 = vcmp.eq.s32.totalorder %v1851_v16, 1 }
0x1213   :  { %v888_v54 = vsel %vm886_vm14, %v874_v6, %v778_v12 }
0x127f   :  { %v878_v9 = vpop.permute.xlu0 %877 }
0x1280   :  { %v880_v28 = vmul.f32 %v878_v9, %v862_v57  ;;  %v853_v29 = vpop.permute.xlu1 %852 }
0x1281   :  { %v855_v47 = vmul.f32 %v853_v29, %v837_v61 }
0x1282   :  { %v887_v30 = vsel %vm886_vm14, %v880_v28, %v1811_v46 }
0x1283   :  { %890 = vrot.lane.b32.xlu1 %v887_v30, %s1397_s22  ;;  %v856_v31 = vsel %vm776_vm12, %v855_v47, %v1818_v45 }
0x1284   :  { %894 = vrot.lane.b32.xlu0 %v856_v31, %s1399_s29 }
0x12f5   :  { %v891_v33 = vpop.permute.xlu1 %890 }
0x12f6   :  { %v895_v7 = vpop.permute.xlu0 %894 }
0x12f7   :  { %v897_v34 = vsel %vm191_vm1, %v891_v33, %v895_v7  ;;  %v1247_v33 = vld [vmem:[%s1921_s5] sm:$0xff]   ;;  %v1400_v7 = vmov 0.0  }
0x12f8   :  { %v898_v35 = vpack.c.bf16 %v897_v34, %v897_v34  ;;  %1210 = vmatprep.subr.bf16.mxu1 %v1400_v7  ;;  %v1248_v34 = vld [vmem:[%s1921_s5 + $0x8] sm:$0xff]   ;;  %s1402_s5 = smov [#allocation5]  }
0x12f9   :  { %s1152_s12 = sshll.u32 %s1402_s5, 4  ;;  %s1153_s12 = int_to_ptr.vmem [resolvable:$true] %s1152_s12 }
0x12fa   :  { %1186 = vmatmul.mubr.msk.bf16.vlgmr.msra.gmra.mrb[12].mxu1 %vm234_vm2, %v898_v35  ;;  %s1367_s13 = scalar_lea.vmem %s1153_s12, 128  ;;  %p1372_p9 = scmp.lt.s32.totalorder %s1153_s12, %s1153_s12 }
0x12fb   :  { %1211 = vmatpush3.bf16.msra.mxu1 %v1247_v33  ;;  %p1368_p8 = scmp.ne.s32.totalorder %s1153_s12, %s1367_s13  ;;  %p1373_p10 = scmp.lt.s32.totalorder %s1367_s13, %s1367_s13 }
0x12fc   :  { %1212 = vmatprep.subr.bf16.mxu1 %v1400_v7 }
0x12fd   :  { %p1374_p11 = por %p1373_p10, %p1372_p9 }
0x12ff   :  { %1213 = vmatpush3.bf16.msra.mxu1 %v1248_v34  ;;  %p1375_p12 = pnand %p1374_p11, %p1368_p8 }
0x13cd   :  { %v936_v4 = vpop.f32.mrb[12].mxu1 }
0x13ce   :  { %v968_v38 = vadd.f32 %v936_v4, %v168_v36  ;;  %v938_v37 = vpop.f32.mrb[13].mxu1 }
0x13cf   :  { %v943_v40 = vadd.f32 %v1538_v32, %v938_v37  ;;  %v940_v39 = vpop.f32.mrb[14].mxu1 }
0x13d0   :  { %1327 = vtanh.f32 %v968_v38  ;;  %v941_v41 = vpop.f32.mrb[15].mxu1  ;;  %v969_v46 = vmul.f32 0.5, %v968_v38 }
0x13d1   :  { %1329 = vtanh.f32 %v943_v40  ;;  %v944_v45 = vmul.f32 0.5, %v943_v40  ;;  %v1188_v40 = vld [vmem:[%s1922_s6] ss:$0 sm:$0xff] }
0x13d2   :  { %1331 = vtanh.f32 %v969_v46 }
0x13d3   :  { %1333 = vtanh.f32 %v944_v45 }
0x13da   :  { %v1328_v42 = vpop.eup %1327 }
0x13db   :  { %v1330_v44 = vpop.eup %1329  ;;  %976 = vrot.lane.b32.xlu0 %v1328_v42, %s1396_s2 }
0x13dc   :  { %951 = vrot.lane.b32.xlu1 %v1330_v44, %s1396_s2  ;;  %v1332_v3 = vpop.eup %1331 }
0x13dd   :  { %v1334_v10 = vpop.eup %1333  ;;  %v971_v51 = vadd.f32 1.0, %v1332_v3 }
0x13de   :  { %v946_v43 = vadd.f32 1.0, %v1334_v10 }
0x13df   :  { %v972_v52 = vmul.f32 0.5, %v971_v51 }
0x13e0   :  { %v947_v55 = vmul.f32 0.5, %v946_v43 }
0x13e1   :  { %v974_v18 = vmul.f32 %v972_v52, %v888_v54 }
0x13e2   :  { %v949_v21 = vmul.f32 %v947_v55, %v857_v19 }
0x144d   :  { %v977_v53 = vpop.permute.xlu0 %976 }
0x144e   :  { %v979_v63 = vmul.f32 %v977_v53, %v972_v52  ;;  %v952_v49 = vpop.permute.xlu1 %951 }
0x144f   :  { %v954_v17 = vmul.f32 %v952_v49, %v947_v55 }
0x1450   :  { %981 = vrot.lane.b32.xlu0 %v979_v63, %s1396_s2 }
0x1451   :  { %956 = vrot.lane.b32.xlu1 %v954_v17, %s1396_s2 }
0x1455   :  { %994 = vperm.xlu1 %1228, %v992_v50  }
0x14c2   :  { %v982_v20 = vpop.permute.xlu0 %981 }
0x14c3   :  { %v984_v23 = vadd.f32 %v982_v20, %v974_v18  ;;  %v957_v24 = vpop.permute.xlu1 %956 }
0x14c4   :  { %v959_v8 = vadd.f32 %v957_v24, %v949_v21 }
0x14c5   :  { %1335 = vtanh.f32 %v984_v23 }
0x14c6   :  { %1337 = vtanh.f32 %v959_v8  ;;  %v967_v47 = vsel %vm886_vm14, %v959_v8, %v857_v19 }
0x14cf   :  { %v1336_v48 = vpop.eup %1335 }
0x14d0   :  { %v1338_v58 = vpop.eup %1337  ;;  %987 = vrot.lane.b32.xlu1 %v1336_v48, %s1396_s2 }
0x14d1   :  { %962 = vrot.lane.b32.xlu0 %v1338_v58, %s1396_s2 }
0x14d4   :  { %v995_v25 = vpop.permute.xlu1 %994 }
0x14d5   :  { %vm996_vm0 = vcmp.eq.s32.totalorder %v995_v25, 1 }
0x1542   :  { %v988_v59 = vpop.permute.xlu1 %987 }
0x1543   :  { %v990_v57 = vmul.f32 %v988_v59, %v972_v52  ;;  %v963_v60 = vpop.permute.xlu0 %962 }
0x1544   :  { %v965_v56 = vmul.f32 %v963_v60, %v947_v55 }
0x1545   :  { %v997_v61 = vsel %vm996_vm0, %v990_v57, %v887_v30 }
0x1546   :  { %999 = vrot.lane.b32.xlu0 %v997_v61, %s1397_s22  ;;  %v966_v62 = vsel %vm886_vm14, %v965_v56, %v856_v31 }
0x1547   :  { %1003 = vrot.lane.b32.xlu1 %v966_v62, %s1399_s29 }
0x15b8   :  { %v1000_v2 = vpop.permute.xlu0 %999 }
0x15b9   :  { %v1004_v5 = vpop.permute.xlu1 %1003 }
0x15ba   :  { %v1006_v0 = vsel %vm191_vm1, %v1000_v2, %v1004_v5 }
0x15bb   :  { %v1007_v12 = vpack.c.bf16 %v1006_v0, %v1006_v0 }
0x15bd   :  { %1187 = vmatmul.mubr.msk.bf16.vlgmr.msra.gmra.mrb[20].mxu0 %vm234_vm2, %v1007_v12  ;;  %vm1401_vm2 = vmmov 0  }
0x15be   :  { %1214 = vmatprep.mubr.msk.bf16.mxu1 %vm1401_vm2, %v1400_v7 }
0x1690   :  { %v1045_v13 = vpop.f32.mrb[20].mxu0 }
0x1691   :  { %v1046_v14 = vpop.f32.mrb[21].mxu0 }
0x1692   :  { %v1051_v1 = vadd.f32 %v1538_v32, %v1046_v14  ;;  %v1048_v11 = vpop.f32.mrb[22].mxu0 }
0x1693   :  { %v1049_v6 = vpop.f32.mrb[23].mxu0 }
0x1694   :  { %1339 = vtanh.f32 %v1051_v1  ;;  %v1052_v22 = vmul.f32 0.5, %v1051_v1 }
0x1696   :  { %1341 = vtanh.f32 %v1052_v22 }
0x169e   :  { %v1340_v15 = vpop.eup %1339 }
0x169f   :  { %1059 = vrot.lane.b32.xlu0 %v1340_v15, %s1396_s2 }
0x16a0   :  { %v1342_v26 = vpop.eup %1341 }
0x16a1   :  { %v1054_v27 = vadd.f32 1.0, %v1342_v26 }
0x16a3   :  { %v1055_v9 = vmul.f32 0.5, %v1054_v27 }
0x16a5   :  { %v1057_v30 = vmul.f32 %v1055_v9, %v967_v47 }
0x1711   :  { %v1060_v28 = vpop.permute.xlu0 %1059 }
0x1712   :  { %v1062_v29 = vmul.f32 %v1060_v28, %v1055_v9 }
0x1714   :  { %1064 = vrot.lane.b32.xlu1 %v1062_v29, %s1396_s2 }
0x1786   :  { %v1065_v32 = vpop.permute.xlu1 %1064 }
0x1787   :  { %v1067_v31 = vadd.f32 %v1065_v32, %v1057_v30 }
0x1789   :  { %1343 = vtanh.f32 %v1067_v31 }
0x1793   :  { %v1344_v16 = vpop.eup %1343 }
0x1794   :  { %1070 = vrot.lane.b32.xlu0 %v1344_v16, %s1396_s2 }
0x1806   :  { %v1071_v35 = vpop.permute.xlu0 %1070 }
0x1807   :  { %v1073_v36 = vmul.f32 %v1071_v35, %v1055_v9 }
0x1809   :  { %v1074_v4 = vsel %vm996_vm0, %v1073_v36, %v966_v62 }
0x180a   :  { %v1075_v38 = vpack.c.bf16 %v1074_v4, %v1074_v4 }
0x180c   :  { %1088 = vrot.lane.b32.xlu1 %v1075_v38, %s1397_s22 }
0x187e   :  { %v1089_v37 = vpop.permute.xlu1 %1088 }
0x187f   :  { %1215 = vmatmul.mubr.msk.bf16.vlgmr.msra.gmra.mrb[16].mxu1 %vm191_vm1, %v1089_v37 }
0x1952   :  { %v1139_v39 = vpop.f32.mrb[16].mxu1 }
0x1953   :  { %v1140_v41 = vadd.f32 %v1188_v40, %v1139_v39  ;;  %v1216_v42 = vpop.f32.mrb[17].mxu1 }
0x1954   :  { %v1142_v44 = vpop.f32.mrb[18].mxu1 }
0x1955   :  { %1145 = vst [vmem:[#allocation5] sm:$0xff] %v1140_v41  ;;  %v1217_v46 = vpop.f32.mrb[19].mxu1 }
0x1956   :  { %1378 = shalt.err (!%p1375_p12)
}
0x1957   :  { %s1379_s6 = scalar_lea.hbm %s1923_s7, 128 }
0x1958   :  { %p1380_p13 = scmp.ne.s32.totalorder %s1923_s7, %s1379_s6  ;;  %p1383_p0 = scmp.lt.u32.totalorder %s1379_s6, %s1923_s7 }
0x195a   :  { %p1385_p1 = pnand %p1383_p0, %p1380_p13 }
0x195c   :  { %1388 = shalt.err (!%p1385_p1)
}
0x195d   :  { %1155 = dma.vmem_to_hbm [thread:$0]  %s1153_s12, 128, %s1923_s7, [#allocation4]  }
0x195e   :  { %1391 = dma.done.wait [#allocation4], 128  }
0x195f   :  { %1392 = vsyncadd [#allocation4], 4294967168 }
0x1960   :  { %1159 = vsyncpa [#allocation3], 1 }
0x1961   :  { %1160 = vsyncpa [#allocation4], 1 }

</bundles_post_ra>
